<compile_context>
chip_gen: v6e
topology: v6e:2x2x1
jax: 0.10.0
libtpu: 0.0.40
codegen_flags: <defaults>
</compile_context>

<pallas_src>
import functools

import jax
import jax.numpy as jnp
import numpy as np
from jax.experimental import pallas as pl
from jax.experimental.pallas import tpu as pltpu

_VMEM_LIMIT = 64 * 1024 * 1024      # explicit scoped-VMEM budget (fits v7x)
_BN_EPS = 1e-5
_LEAKY_SLOPE = 0.2


def _leaky(y):
    return jnp.where(y > 0, y, _LEAKY_SLOPE * y)


# -----------------------------------------------------------------------------
# Pallas kernels — all operate on the transposed, lane-dense (C_out, M) layout
# -----------------------------------------------------------------------------
def _conv_act_kernel(w_ref, p_ref, o_ref):
    """One M-tile of layer 1: LeakyReLU(W (Cout,K) @ patches (K, TILE_M))."""
    y = jnp.dot(w_ref[...], p_ref[...], preferred_element_type=jnp.float32)
    o_ref[...] = _leaky(y)


def _conv_bn_act_kernel(w_ref, p_ref, g_ref, b_ref, o_ref, *, inv_m):
    """Fused conv-as-matmul + training-mode BatchNorm + LeakyReLU(0.2).

    In the (C_out, M) layout BN's per-channel reduction over (N, H, W) is a
    per-sublane-row reduction over the lane axis, done in a single pass with
    sum and sum-of-squares.
    """
    y = jnp.dot(w_ref[...], p_ref[...], preferred_element_type=jnp.float32)
    s1 = jnp.sum(y, axis=1, keepdims=True)
    s2 = jnp.sum(y * y, axis=1, keepdims=True)
    mean = s1 * inv_m
    var = jnp.maximum(s2 * inv_m - mean * mean, 0.0)
    y = (y - mean) * jax.lax.rsqrt(var + _BN_EPS)
    y = y * g_ref[...] + b_ref[...]
    o_ref[...] = _leaky(y)


def _conv_bn_act_head_kernel(w_ref, p_ref, g_ref, b_ref, w5_ref, sel_ref, o_ref,
                             *, inv_m):
    """Layer 4 (conv + BN + LeakyReLU) with layer 5 (1 x (4x4xC4) conv + sigmoid)
    fused in as an epilogue — no dedicated layer-5 pallas_call / im2col."""
    y = jnp.dot(w_ref[...], p_ref[...], preferred_element_type=jnp.float32)
    s1 = jnp.sum(y, axis=1, keepdims=True)
    s2 = jnp.sum(y * y, axis=1, keepdims=True)
    mean = s1 * inv_m
    var = jnp.maximum(s2 * inv_m - mean * mean, 0.0)
    y = (y - mean) * jax.lax.rsqrt(var + _BN_EPS)
    y = y * g_ref[...] + b_ref[...]
    y = _leaky(y)                                            # (C4, N*16)

    # conv5: per-sample full 4x4xC4 dot.  w5_ref is w5 tiled once per sample
    # and sel_ref is the (N*16, N) 0/1 per-sample summation matrix, so the
    # epilogue is an elementwise mul + one tiny matmul + a sublane reduction.
    prod = y * w5_ref[...]                                   # (C4, N*16)
    per_sample = jnp.dot(prod, sel_ref[...],
                         preferred_element_type=jnp.float32)  # (C4, N)
    score = jnp.sum(per_sample, axis=0, keepdims=True)        # (1, N)
    o_ref[...] = jax.nn.sigmoid(score)


# -----------------------------------------------------------------------------
# pallas_call wrappers
# -----------------------------------------------------------------------------
def _conv_act_tiled(w, patches, tile_m=512):
    """Layer 1 (no BN): grid over M, pipelined, lane-dense (Cout, M) output."""
    cout, k = w.shape
    m = patches.shape[1]
    assert m % tile_m == 0, (m, tile_m)
    return pl.pallas_call(
        _conv_act_kernel,
        out_shape=jax.ShapeDtypeStruct((cout, m), jnp.float32),
        grid=(m // tile_m,),
        in_specs=[pl.BlockSpec((cout, k), lambda i: (0, 0)),
                  pl.BlockSpec((k, tile_m), lambda i: (0, i))],
        out_specs=pl.BlockSpec((cout, tile_m), lambda i: (0, i)),
        compiler_params=pltpu.CompilerParams(
            dimension_semantics=("parallel",),   # megacore / v7x dual-TC split
            vmem_limit_bytes=_VMEM_LIMIT),
    )(w, patches)


def _conv_bn_act(w, patches, gamma, beta):
    cout = w.shape[0]
    m = patches.shape[1]
    kern = functools.partial(_conv_bn_act_kernel, inv_m=1.0 / m)
    vmem = pl.BlockSpec(memory_space=pltpu.MemorySpace.VMEM)
    return pl.pallas_call(
        kern,
        out_shape=jax.ShapeDtypeStruct((cout, m), jnp.float32),
        in_specs=[vmem, vmem, vmem, vmem],
        out_specs=vmem,
        compiler_params=pltpu.CompilerParams(vmem_limit_bytes=_VMEM_LIMIT),
    )(w, patches, gamma, beta)


def _conv_bn_act_head(w4, patches, gamma, beta, w5_rep, sel):
    m = patches.shape[1]
    n = sel.shape[1]
    kern = functools.partial(_conv_bn_act_head_kernel, inv_m=1.0 / m)
    vmem = pl.BlockSpec(memory_space=pltpu.MemorySpace.VMEM)
    return pl.pallas_call(
        kern,
        out_shape=jax.ShapeDtypeStruct((1, n), jnp.float32),
        in_specs=[vmem] * 6,
        out_specs=vmem,
        compiler_params=pltpu.CompilerParams(vmem_limit_bytes=_VMEM_LIMIT),
    )(w4, patches, gamma, beta, w5_rep, sel)


# -----------------------------------------------------------------------------
# Channel-major, transpose-free im2col glue (stays in XLA — see TODO above)
# -----------------------------------------------------------------------------
def _im2col_T(a, k, s, p):
    """a: (C, N, H, W) -> patches (C*k*k, N*Ho*Wo) in the transposed layout.

    Row order (c, kh, kw) matches a plain reshape of the PyTorch weight
    (Cout, Cin, kh, kw) -> (Cout, Cin*k*k); column order is (n, ho, wo).
    No transposes: the channel-major layout is preserved end-to-end.
    """
    c, n, h, w = a.shape
    ho = (h + 2 * p - k) // s + 1
    wo = (w + 2 * p - k) // s + 1
    ap = jnp.pad(a, ((0, 0), (0, 0), (p, p), (p, p)))
    taps = [ap[:, :, i:i + s * (ho - 1) + 1:s, j:j + s * (wo - 1) + 1:s]
            for i in range(k) for j in range(k)]     # each (C, N, Ho, Wo)
    pat = jnp.stack(taps, axis=1)                    # (C, k*k, N, Ho, Wo)
    return pat.reshape(c * k * k, n * ho * wo), ho, wo


# -----------------------------------------------------------------------------
# Parameters (DISCRIMINATOR_FEATURES_NUM = ndf = 8; PyTorch-style init)
# -----------------------------------------------------------------------------
def make_params(key, ndf=8):
    ks = jax.random.split(key, 5)

    def conv_w(kk, cout, cin, ksz):
        return (0.02 * jax.random.normal(kk, (cout, cin, ksz, ksz))).astype(jnp.float32)

    return {
        "w1": conv_w(ks[0], ndf, 3, 5),
        "w2": conv_w(ks[1], ndf * 2, ndf, 4),
        "w3": conv_w(ks[2], ndf * 4, ndf * 2, 4),
        "w4": conv_w(ks[3], ndf * 8, ndf * 4, 4),
        "w5": conv_w(ks[4], 1, ndf * 8, 4),
        # BN affine params as (C, 1) columns: broadcast over the lane (M) axis.
        "g2": jnp.ones((ndf * 2, 1), jnp.float32), "b2": jnp.zeros((ndf * 2, 1), jnp.float32),
        "g3": jnp.ones((ndf * 4, 1), jnp.float32), "b3": jnp.zeros((ndf * 4, 1), jnp.float32),
        "g4": jnp.ones((ndf * 8, 1), jnp.float32), "b4": jnp.zeros((ndf * 8, 1), jnp.float32),
    }


# -----------------------------------------------------------------------------
# DiscriminatorNet forward
# -----------------------------------------------------------------------------
def discriminator_forward(x, params):
    """x: (N, 3, 96, 96) float32 NCHW (PyTorch layout) -> (N,) sigmoid scores."""
    n = x.shape[0]
    ndf = params["w1"].shape[0]

    # Single entry-point layout change to channel-major (C, N, H, W); all later
    # activations stay channel-major, so there are zero per-layer transposes.
    a = jnp.transpose(x, (1, 0, 2, 3))

    # ---- layer 1: Conv(3 -> ndf, k5 s3 p1) + LeakyReLU   (M-tiled grid)
    p1, ho, wo = _im2col_T(a, 5, 3, 1)                        # (75, N*32*32)
    k_pad = 128                                               # align contraction
    p1 = jnp.pad(p1, ((0, k_pad - p1.shape[0]), (0, 0)))
    w1 = jnp.pad(params["w1"].reshape(ndf, -1), ((0, 0), (0, k_pad - 75)))
    y = _conv_act_tiled(w1, p1)                               # (ndf, N*32*32)
    a = y.reshape(ndf, n, ho, wo)

    # ---- layer 2: Conv(ndf -> 2ndf, k4 s2 p1) + BN + LeakyReLU
    p2, ho, wo = _im2col_T(a, 4, 2, 1)                        # (ndf*16, N*16*16)
    y = _conv_bn_act(params["w2"].reshape(ndf * 2, -1), p2, params["g2"], params["b2"])
    a = y.reshape(ndf * 2, n, ho, wo)

    # ---- layer 3: Conv(2ndf -> 4ndf, k4 s2 p1) + BN + LeakyReLU
    p3, ho, wo = _im2col_T(a, 4, 2, 1)                        # (2ndf*16, N*8*8)
    y = _conv_bn_act(params["w3"].reshape(ndf * 4, -1), p3, params["g3"], params["b3"])
    a = y.reshape(ndf * 4, n, ho, wo)

    # ---- layers 4+5 (fused): Conv(4ndf -> 8ndf) + BN + LeakyReLU,
    #      then Conv(8ndf -> 1, k4 s1 p0) + sigmoid as an in-kernel epilogue.
    p4, ho, wo = _im2col_T(a, 4, 2, 1)                        # (4ndf*16, N*4*4)
    w5f = params["w5"].reshape(ndf * 8, ho * wo)              # (8ndf, 16)
    w5_rep = jnp.tile(w5f, (1, n))                            # (8ndf, N*16)
    sel = jnp.repeat(jnp.eye(n, dtype=jnp.float32), ho * wo, axis=0)  # (N*16, N)
    scores = _conv_bn_act_head(params["w4"].reshape(ndf * 8, -1), p4,
                               params["g4"], params["b4"], w5_rep, sel)  # (1, N)
    return scores.reshape(-1)                                 # PyTorch .view(-1)


# -----------------------------------------------------------------------------
# Pure-JAX f32/HIGHEST reference (same semantics) for the correctness check
# -----------------------------------------------------------------------------
def _ref_conv(x, w, stride, pad):
    return jax.lax.conv_general_dilated(
        x, w, (stride, stride), [(pad, pad), (pad, pad)],
        dimension_numbers=("NCHW", "OIHW", "NCHW"),
        precision=jax.lax.Precision.HIGHEST)


def _ref_bn(x, gamma, beta):
    mean = jnp.mean(x, axis=(0, 2, 3), keepdims=True)
    var = jnp.mean((x - mean) ** 2, axis=(0, 2, 3), keepdims=True)
    xn = (x - mean) * jax.lax.rsqrt(var + _BN_EPS)
    return xn * gamma.reshape(1, -1, 1, 1) + beta.reshape(1, -1, 1, 1)


def reference_forward(x, p):
    h = _leaky(_ref_conv(x, p["w1"], 3, 1))
    h = _leaky(_ref_bn(_ref_conv(h, p["w2"], 2, 1), p["g2"], p["b2"]))
    h = _leaky(_ref_bn(_ref_conv(h, p["w3"], 2, 1), p["g3"], p["b3"]))
    h = _leaky(_ref_bn(_ref_conv(h, p["w4"], 2, 1), p["g4"], p["b4"]))
    h = jax.nn.sigmoid(_ref_conv(h, p["w5"], 1, 0))
    return h.reshape(-1)


if __name__ == "__main__":
    key = jax.random.PRNGKey(0)
    k_x, k_p = jax.random.split(key)

    batch = 2
    x = jax.random.normal(k_x, (batch, 3, 96, 96), dtype=jnp.float32)
    params = make_params(k_p, ndf=8)

    fwd = jax.jit(discriminator_forward)
    out = jax.block_until_ready(fwd(x, params))
    ref = jax.block_until_ready(reference_forward(x, params))

    assert out.shape == (batch,), out.shape
    # Kernels use default single-pass MXU precision (per perf review) vs. the
    # HIGHEST-precision f32 reference, hence the 2e-2 tolerance on the scores.
    np.testing.assert_allclose(np.asarray(out), np.asarray(ref), rtol=2e-2, atol=2e-2)
    print("KERNEL_OK")
</pallas_src>

<mosaic_0001>
module attributes {stable_mosaic.version = 11 : i64} {
  func.func @_conv_act_kernel(%arg0: i32, %arg1: memref<8x128xf32, #tpu.memory_space<vmem>>, %arg2: memref<128x512xf32, #tpu.memory_space<vmem>>, %arg3: memref<8x512xf32, #tpu.memory_space<vmem>>) attributes {dimension_semantics = [#tpu.dimension_semantics<parallel>], iteration_bounds = array<i64: 4>, scalar_prefetch = 0 : i64, scratch_operands = 0 : i64, tpu.core_type = #tpu.core_type<tc>, window_params = [{pipeline_mode = #tpu.pipeline_mode<synchronous>, transform_indices = @transform_0, window_bounds = array<i64: 8, 128>}, {transform_indices = @transform_1, window_bounds = array<i64: 128, 512>}, {transform_indices = @transform_2, window_bounds = array<i64: 8, 512>}]} {
    %c0 = arith.constant 0 : index
    %c0_0 = arith.constant 0 : index
    %0 = vector.load %arg1[%c0, %c0_0] : memref<8x128xf32, #tpu.memory_space<vmem>>, vector<8x128xf32>
    %c0_1 = arith.constant 0 : index
    %c0_2 = arith.constant 0 : index
    %1 = vector.load %arg2[%c0_1, %c0_2] : memref<128x512xf32, #tpu.memory_space<vmem>>, vector<128x512xf32>
    %cst = arith.constant dense<0.000000e+00> : vector<8x512xf32>
    %2 = tpu.matmul %0, %1, %cst {dimension_numbers = #tpu.dot_dimension_numbers<[1], [0], [0], [1], [0, 0, 1, 1], [], []>} : vector<8x128xf32>, vector<128x512xf32>, vector<8x512xf32> -> vector<8x512xf32>
    %cst_3 = arith.constant 0.000000e+00 : f32
    %3 = vector.broadcast %cst_3 : f32 to vector<8x512xf32>
    %4 = arith.cmpf ogt, %2, %3 : vector<8x512xf32>
    %cst_4 = arith.constant 2.000000e-01 : f32
    %5 = vector.broadcast %cst_4 : f32 to vector<8x512xf32>
    %6 = arith.mulf %5, %2 : vector<8x512xf32>
    %7 = arith.select %4, %2, %6 : vector<8x512xi1>, vector<8x512xf32>
    %c0_5 = arith.constant 0 : index
    %c0_6 = arith.constant 0 : index
    %8 = vector.load %arg3[%c0_5, %c0_6] : memref<8x512xf32, #tpu.memory_space<vmem>>, vector<8x512xf32>
    tpu.vector_store %arg3[%c0_5, %c0_6], %7 {strides = array<i32>} : memref<8x512xf32, #tpu.memory_space<vmem>>, vector<8x512xf32>,
    return
  }
  func.func @transform_0(%arg0: i32) -> (i32, i32) {
    %c0_i32 = arith.constant 0 : i32
    %c0_i32_0 = arith.constant 0 : i32
    %c0_i32_1 = arith.constant 0 : i32
    return %c0_i32, %c0_i32_0 : i32, i32
  }
  func.func @transform_1(%arg0: i32) -> (i32, i32) {
    %c0_i32 = arith.constant 0 : i32
    %c0_i32_0 = arith.constant 0 : i32
    return %c0_i32, %arg0 : i32, i32
  }
  func.func @transform_2(%arg0: i32) -> (i32, i32) {
    %c0_i32 = arith.constant 0 : i32
    %c0_i32_0 = arith.constant 0 : i32
    return %c0_i32, %arg0 : i32, i32
  }
}

module attributes {stable_mosaic.version = 11 : i64} {
  func.func @_conv_bn_act_kernel(%arg0: memref<16x128xf32, #tpu.memory_space<vmem>>, %arg1: memref<128x512xf32, #tpu.memory_space<vmem>>, %arg2: memref<16x1xf32, #tpu.memory_space<vmem>>, %arg3: memref<16x1xf32, #tpu.memory_space<vmem>>, %arg4: memref<16x512xf32, #tpu.memory_space<vmem>>) attributes {dimension_semantics = [], scalar_prefetch = 0 : i64, scratch_operands = 0 : i64, tpu.core_type = #tpu.core_type<tc>} {
    %c0 = arith.constant 0 : index
    %c0_0 = arith.constant 0 : index
    %0 = vector.load %arg0[%c0, %c0_0] : memref<16x128xf32, #tpu.memory_space<vmem>>, vector<16x128xf32>
    %c0_1 = arith.constant 0 : index
    %c0_2 = arith.constant 0 : index
    %1 = vector.load %arg1[%c0_1, %c0_2] : memref<128x512xf32, #tpu.memory_space<vmem>>, vector<128x512xf32>
    %cst = arith.constant dense<0.000000e+00> : vector<16x512xf32>
    %2 = tpu.matmul %0, %1, %cst {dimension_numbers = #tpu.dot_dimension_numbers<[1], [0], [0], [1], [0, 0, 1, 1], [], []>} : vector<16x128xf32>, vector<128x512xf32>, vector<16x512xf32> -> vector<16x512xf32>
    %cst_3 = arith.constant dense<0.000000e+00> : vector<16xf32>
    %3 = vector.multi_reduction <add>, %2, %cst_3 [1] : vector<16x512xf32> to vector<16xf32>
    %4 = vector.shape_cast %3 : vector<16xf32> to vector<16x1xf32>
    %5 = arith.mulf %2, %2 : vector<16x512xf32>
    %cst_4 = arith.constant dense<0.000000e+00> : vector<16xf32>
    %6 = vector.multi_reduction <add>, %5, %cst_4 [1] : vector<16x512xf32> to vector<16xf32>
    %7 = vector.shape_cast %6 : vector<16xf32> to vector<16x1xf32>
    %cst_5 = arith.constant 0.001953125 : f32
    %8 = vector.broadcast %cst_5 : f32 to vector<16x1xf32>
    %9 = arith.mulf %4, %8 : vector<16x1xf32>
    %cst_6 = arith.constant 0.001953125 : f32
    %10 = vector.broadcast %cst_6 : f32 to vector<16x1xf32>
    %11 = arith.mulf %7, %10 : vector<16x1xf32>
    %12 = arith.mulf %9, %9 : vector<16x1xf32>
    %13 = arith.subf %11, %12 : vector<16x1xf32>
    %cst_7 = arith.constant 0.000000e+00 : f32
    %14 = vector.broadcast %cst_7 : f32 to vector<16x1xf32>
    %15 = arith.maximumf %13, %14 : vector<16x1xf32>
    %16 = vector.broadcast %9 : vector<16x1xf32> to vector<16x512xf32>
    %17 = arith.subf %2, %16 : vector<16x512xf32>
    %cst_8 = arith.constant 9.99999974E-6 : f32
    %18 = vector.broadcast %cst_8 : f32 to vector<16x1xf32>
    %19 = arith.addf %15, %18 : vector<16x1xf32>
    %20 = math.rsqrt %19 : vector<16x1xf32>
    %21 = vector.broadcast %20 : vector<16x1xf32> to vector<16x512xf32>
    %22 = arith.mulf %17, %21 : vector<16x512xf32>
    %c0_9 = arith.constant 0 : index
    %c0_10 = arith.constant 0 : index
    %23 = vector.load %arg2[%c0_9, %c0_10] : memref<16x1xf32, #tpu.memory_space<vmem>>, vector<16x1xf32>
    %24 = vector.broadcast %23 : vector<16x1xf32> to vector<16x512xf32>
    %25 = arith.mulf %22, %24 : vector<16x512xf32>
    %c0_11 = arith.constant 0 : index
    %c0_12 = arith.constant 0 : index
    %26 = vector.load %arg3[%c0_11, %c0_12] : memref<16x1xf32, #tpu.memory_space<vmem>>, vector<16x1xf32>
    %27 = vector.broadcast %26 : vector<16x1xf32> to vector<16x512xf32>
    %28 = arith.addf %25, %27 : vector<16x512xf32>
    %cst_13 = arith.constant 0.000000e+00 : f32
    %29 = vector.broadcast %cst_13 : f32 to vector<16x512xf32>
    %30 = arith.cmpf ogt, %28, %29 : vector<16x512xf32>
    %cst_14 = arith.constant 2.000000e-01 : f32
    %31 = vector.broadcast %cst_14 : f32 to vector<16x512xf32>
    %32 = arith.mulf %31, %28 : vector<16x512xf32>
    %33 = arith.select %30, %28, %32 : vector<16x512xi1>, vector<16x512xf32>
    %c0_15 = arith.constant 0 : index
    %c0_16 = arith.constant 0 : index
    %34 = vector.load %arg4[%c0_15, %c0_16] : memref<16x512xf32, #tpu.memory_space<vmem>>, vector<16x512xf32>
    tpu.vector_store %arg4[%c0_15, %c0_16], %33 {strides = array<i32>} : memref<16x512xf32, #tpu.memory_space<vmem>>, vector<16x512xf32>,
    return
  }
}

module attributes {stable_mosaic.version = 11 : i64} {
  func.func @_conv_bn_act_kernel(%arg0: memref<32x256xf32, #tpu.memory_space<vmem>>, %arg1: memref<256x128xf32, #tpu.memory_space<vmem>>, %arg2: memref<32x1xf32, #tpu.memory_space<vmem>>, %arg3: memref<32x1xf32, #tpu.memory_space<vmem>>, %arg4: memref<32x128xf32, #tpu.memory_space<vmem>>) attributes {dimension_semantics = [], scalar_prefetch = 0 : i64, scratch_operands = 0 : i64, tpu.core_type = #tpu.core_type<tc>} {
    %c0 = arith.constant 0 : index
    %c0_0 = arith.constant 0 : index
    %0 = vector.load %arg0[%c0, %c0_0] : memref<32x256xf32, #tpu.memory_space<vmem>>, vector<32x256xf32>
    %c0_1 = arith.constant 0 : index
    %c0_2 = arith.constant 0 : index
    %1 = vector.load %arg1[%c0_1, %c0_2] : memref<256x128xf32, #tpu.memory_space<vmem>>, vector<256x128xf32>
    %cst = arith.constant dense<0.000000e+00> : vector<32x128xf32>
    %2 = tpu.matmul %0, %1, %cst {dimension_numbers = #tpu.dot_dimension_numbers<[1], [0], [0], [1], [0, 0, 1, 1], [], []>} : vector<32x256xf32>, vector<256x128xf32>, vector<32x128xf32> -> vector<32x128xf32>
    %cst_3 = arith.constant dense<0.000000e+00> : vector<32xf32>
    %3 = vector.multi_reduction <add>, %2, %cst_3 [1] : vector<32x128xf32> to vector<32xf32>
    %4 = vector.shape_cast %3 : vector<32xf32> to vector<32x1xf32>
    %5 = arith.mulf %2, %2 : vector<32x128xf32>
    %cst_4 = arith.constant dense<0.000000e+00> : vector<32xf32>
    %6 = vector.multi_reduction <add>, %5, %cst_4 [1] : vector<32x128xf32> to vector<32xf32>
    %7 = vector.shape_cast %6 : vector<32xf32> to vector<32x1xf32>
    %cst_5 = arith.constant 7.812500e-03 : f32
    %8 = vector.broadcast %cst_5 : f32 to vector<32x1xf32>
    %9 = arith.mulf %4, %8 : vector<32x1xf32>
    %cst_6 = arith.constant 7.812500e-03 : f32
    %10 = vector.broadcast %cst_6 : f32 to vector<32x1xf32>
    %11 = arith.mulf %7, %10 : vector<32x1xf32>
    %12 = arith.mulf %9, %9 : vector<32x1xf32>
    %13 = arith.subf %11, %12 : vector<32x1xf32>
    %cst_7 = arith.constant 0.000000e+00 : f32
    %14 = vector.broadcast %cst_7 : f32 to vector<32x1xf32>
    %15 = arith.maximumf %13, %14 : vector<32x1xf32>
    %16 = vector.broadcast %9 : vector<32x1xf32> to vector<32x128xf32>
    %17 = arith.subf %2, %16 : vector<32x128xf32>
    %cst_8 = arith.constant 9.99999974E-6 : f32
    %18 = vector.broadcast %cst_8 : f32 to vector<32x1xf32>
    %19 = arith.addf %15, %18 : vector<32x1xf32>
    %20 = math.rsqrt %19 : vector<32x1xf32>
    %21 = vector.broadcast %20 : vector<32x1xf32> to vector<32x128xf32>
    %22 = arith.mulf %17, %21 : vector<32x128xf32>
    %c0_9 = arith.constant 0 : index
    %c0_10 = arith.constant 0 : index
    %23 = vector.load %arg2[%c0_9, %c0_10] : memref<32x1xf32, #tpu.memory_space<vmem>>, vector<32x1xf32>
    %24 = vector.broadcast %23 : vector<32x1xf32> to vector<32x128xf32>
    %25 = arith.mulf %22, %24 : vector<32x128xf32>
    %c0_11 = arith.constant 0 : index
    %c0_12 = arith.constant 0 : index
    %26 = vector.load %arg3[%c0_11, %c0_12] : memref<32x1xf32, #tpu.memory_space<vmem>>, vector<32x1xf32>
    %27 = vector.broadcast %26 : vector<32x1xf32> to vector<32x128xf32>
    %28 = arith.addf %25, %27 : vector<32x128xf32>
    %cst_13 = arith.constant 0.000000e+00 : f32
    %29 = vector.broadcast %cst_13 : f32 to vector<32x128xf32>
    %30 = arith.cmpf ogt, %28, %29 : vector<32x128xf32>
    %cst_14 = arith.constant 2.000000e-01 : f32
    %31 = vector.broadcast %cst_14 : f32 to vector<32x128xf32>
    %32 = arith.mulf %31, %28 : vector<32x128xf32>
    %33 = arith.select %30, %28, %32 : vector<32x128xi1>, vector<32x128xf32>
    %c0_15 = arith.constant 0 : index
    %c0_16 = arith.constant 0 : index
    %34 = vector.load %arg4[%c0_15, %c0_16] : memref<32x128xf32, #tpu.memory_space<vmem>>, vector<32x128xf32>
    tpu.vector_store %arg4[%c0_15, %c0_16], %33 {strides = array<i32>} : memref<32x128xf32, #tpu.memory_space<vmem>>, vector<32x128xf32>,
    return
  }
}

module attributes {stable_mosaic.version = 11 : i64} {
  func.func @_conv_bn_act_head_kernel(%arg0: memref<64x512xf32, #tpu.memory_space<vmem>>, %arg1: memref<512x32xf32, #tpu.memory_space<vmem>>, %arg2: memref<64x1xf32, #tpu.memory_space<vmem>>, %arg3: memref<64x1xf32, #tpu.memory_space<vmem>>, %arg4: memref<64x32xf32, #tpu.memory_space<vmem>>, %arg5: memref<32x2xf32, #tpu.memory_space<vmem>>, %arg6: memref<1x2xf32, #tpu.memory_space<vmem>>) attributes {dimension_semantics = [], scalar_prefetch = 0 : i64, scratch_operands = 0 : i64, tpu.core_type = #tpu.core_type<tc>} {
    %c0 = arith.constant 0 : index
    %c0_0 = arith.constant 0 : index
    %0 = vector.load %arg0[%c0, %c0_0] : memref<64x512xf32, #tpu.memory_space<vmem>>, vector<64x512xf32>
    %c0_1 = arith.constant 0 : index
    %c0_2 = arith.constant 0 : index
    %1 = vector.load %arg1[%c0_1, %c0_2] : memref<512x32xf32, #tpu.memory_space<vmem>>, vector<512x32xf32>
    %cst = arith.constant dense<0.000000e+00> : vector<64x32xf32>
    %2 = tpu.matmul %0, %1, %cst {dimension_numbers = #tpu.dot_dimension_numbers<[1], [0], [0], [1], [0, 0, 1, 1], [], []>} : vector<64x512xf32>, vector<512x32xf32>, vector<64x32xf32> -> vector<64x32xf32>
    %cst_3 = arith.constant dense<0.000000e+00> : vector<64xf32>
    %3 = vector.multi_reduction <add>, %2, %cst_3 [1] : vector<64x32xf32> to vector<64xf32>
    %4 = vector.shape_cast %3 : vector<64xf32> to vector<64x1xf32>
    %5 = arith.mulf %2, %2 : vector<64x32xf32>
    %cst_4 = arith.constant dense<0.000000e+00> : vector<64xf32>
    %6 = vector.multi_reduction <add>, %5, %cst_4 [1] : vector<64x32xf32> to vector<64xf32>
    %7 = vector.shape_cast %6 : vector<64xf32> to vector<64x1xf32>
    %cst_5 = arith.constant 3.125000e-02 : f32
    %8 = vector.broadcast %cst_5 : f32 to vector<64x1xf32>
    %9 = arith.mulf %4, %8 : vector<64x1xf32>
    %cst_6 = arith.constant 3.125000e-02 : f32
    %10 = vector.broadcast %cst_6 : f32 to vector<64x1xf32>
    %11 = arith.mulf %7, %10 : vector<64x1xf32>
    %12 = arith.mulf %9, %9 : vector<64x1xf32>
    %13 = arith.subf %11, %12 : vector<64x1xf32>
    %cst_7 = arith.constant 0.000000e+00 : f32
    %14 = vector.broadcast %cst_7 : f32 to vector<64x1xf32>
    %15 = arith.maximumf %13, %14 : vector<64x1xf32>
    %16 = vector.broadcast %9 : vector<64x1xf32> to vector<64x32xf32>
    %17 = arith.subf %2, %16 : vector<64x32xf32>
    %cst_8 = arith.constant 9.99999974E-6 : f32
    %18 = vector.broadcast %cst_8 : f32 to vector<64x1xf32>
    %19 = arith.addf %15, %18 : vector<64x1xf32>
    %20 = math.rsqrt %19 : vector<64x1xf32>
    %21 = vector.broadcast %20 : vector<64x1xf32> to vector<64x32xf32>
    %22 = arith.mulf %17, %21 : vector<64x32xf32>
    %c0_9 = arith.constant 0 : index
    %c0_10 = arith.constant 0 : index
    %23 = vector.load %arg2[%c0_9, %c0_10] : memref<64x1xf32, #tpu.memory_space<vmem>>, vector<64x1xf32>
    %24 = vector.broadcast %23 : vector<64x1xf32> to vector<64x32xf32>
    %25 = arith.mulf %22, %24 : vector<64x32xf32>
    %c0_11 = arith.constant 0 : index
    %c0_12 = arith.constant 0 : index
    %26 = vector.load %arg3[%c0_11, %c0_12] : memref<64x1xf32, #tpu.memory_space<vmem>>, vector<64x1xf32>
    %27 = vector.broadcast %26 : vector<64x1xf32> to vector<64x32xf32>
    %28 = arith.addf %25, %27 : vector<64x32xf32>
    %cst_13 = arith.constant 0.000000e+00 : f32
    %29 = vector.broadcast %cst_13 : f32 to vector<64x32xf32>
    %30 = arith.cmpf ogt, %28, %29 : vector<64x32xf32>
    %cst_14 = arith.constant 2.000000e-01 : f32
    %31 = vector.broadcast %cst_14 : f32 to vector<64x32xf32>
    %32 = arith.mulf %31, %28 : vector<64x32xf32>
    %33 = arith.select %30, %28, %32 : vector<64x32xi1>, vector<64x32xf32>
    %c0_15 = arith.constant 0 : index
    %c0_16 = arith.constant 0 : index
    %34 = vector.load %arg4[%c0_15, %c0_16] : memref<64x32xf32, #tpu.memory_space<vmem>>, vector<64x32xf32>
    %35 = arith.mulf %33, %34 : vector<64x32xf32>
    %c0_17 = arith.constant 0 : index
    %c0_18 = arith.constant 0 : index
    %36 = vector.load %arg5[%c0_17, %c0_18] : memref<32x2xf32, #tpu.memory_space<vmem>>, vector<32x2xf32>
    %cst_19 = arith.constant dense<0.000000e+00> : vector<64x2xf32>
    %37 = tpu.matmul %35, %36, %cst_19 {dimension_numbers = #tpu.dot_dimension_numbers<[1], [0], [0], [1], [0, 0, 1, 1], [], []>} : vector<64x32xf32>, vector<32x2xf32>, vector<64x2xf32> -> vector<64x2xf32>
    %cst_20 = arith.constant dense<0.000000e+00> : vector<2xf32>
    %38 = vector.multi_reduction <add>, %37, %cst_20 [0] : vector<64x2xf32> to vector<2xf32>
    %39 = vector.shape_cast %38 : vector<2xf32> to vector<1x2xf32>
    %40 = arith.negf %39 : vector<1x2xf32>
    %41 = math.exp %40 : vector<1x2xf32>
    %cst_21 = arith.constant 1.000000e+00 : f32
    %42 = vector.broadcast %cst_21 : f32 to vector<1x2xf32>
    %43 = arith.addf %42, %41 : vector<1x2xf32>
    %44 = arith.divf %42, %43 : vector<1x2xf32>
    %c0_22 = arith.constant 0 : index
    %c0_23 = arith.constant 0 : index
    %45 = vector.load %arg6[%c0_22, %c0_23] : memref<1x2xf32, #tpu.memory_space<vmem>>, vector<1x2xf32>
    tpu.vector_store %arg6[%c0_22, %c0_23], %44 {strides = array<i32>} : memref<1x2xf32, #tpu.memory_space<vmem>>, vector<1x2xf32>,
    return
  }
}

</mosaic_0001>

<bundles_post_ra>
// kernel: discriminator_forward.4
= control target key start
LH: loop header
LB: loop body
LE: loop exit
PB: predicated region body
PF: predicated region fallthrough
CT: control target
= control target key end

     0   :  { %s656_s9 = smov 0   ;;  %s658_s10 = smov 0   ;;  %s909_s0 = inlined_call_operand.vmem [shape: f32[8,128], index: 0, kind: input, shape index: {}]   ;;  %s910_s1 = inlined_call_operand.vmem [shape: f32[128,2048], index: 1, kind: input, shape index: {}]   ;;  %s911_s2 = inlined_call_operand.vmem [shape: f32[8,2048], index: 2, kind: output, shape index: {}]  }
   0x1   :  { %s660_s11 = smov 0  }
   0x2 LB: > { %s577_s12 = sadd.s32 4294967295, %s638_s11   ;;  %s673_s13 = sadd.s32 1, %s638_s11   ;;  %s638_s11 = sphi %s660_s11, %s914_s11   ;;  %s634_s10 = sphi %s658_s10, %s913_s10   ;;  %s630_s9 = sphi %s656_s9, %s912_s9  }
   0x3   : > { %s37_s14 = ssub.s32 %s638_s11, %s673_s13  ;;  %s40_s15 = sadd.s32 1, %s634_s10 }
   0x4   : > { %p38_p0 = scmp.eq.s32.totalorder %s37_s14, 0  ;;  %p47_p1 = scmp.ne.s32.totalorder %s634_s10, %s630_s9 }
   0x5   : > { %p48_p2 = scmp.eq.s32.totalorder %s638_s11, 0  ;;  %p580_p4 = scmp.ge.s32.totalorder %s638_s11, 4 }
   0x6   : > { %s682_s16 = scalar_select %p38_p0, %s634_s10, %s40_s15  }
   0x7   : > { %p49_p3 = por %p48_p2, %p47_p1  ;;  %102 = sbr.rel (%p580_p4) target bundleno = 48 (0x30), region = 20 }
   0xc   : > { %105 = sbr.rel (!%p49_p3) target bundleno = 48 (0x30), region = 24  ;;  %s107_s17 = sand.u32 (%p49_p3), 1, %s634_s10  }
   0xd   : > { %s590_s18 = sshll.u32 (%p49_p3), %s638_s11, 5  ;;  %s581_s19 = sshll.u32 (%p49_p3), %s107_s17, 9 }
   0xe   : > { %s690_s22 = scalar_lea.vmem (%p49_p3), %s910_s1, %s590_s18  ;;  %s695_s23 = scalar_lea.vmem (%p49_p3), [#allocation2], %s581_s19 }
   0xf   : > { %v125_v0 = vld [vmem:[%s690_s22] sm:$0xff] (%p49_p3)  ;;  %v127_v1 = vld [vmem:[%s690_s22 + $0x8] sm:$0xff] (%p49_p3)  ;;  %v129_v2 = vld [vmem:[%s690_s22 + $0x10] sm:$0xff] (%p49_p3) }
  0x10   : > { %126 = vst [vmem:[%s695_s23] sm:$0xff] (%p49_p3), %v125_v0  ;;  %128 = vst [vmem:[%s695_s23 + $0x8] sm:$0xff] (%p49_p3), %v127_v1  ;;  %v131_v3 = vld [vmem:[%s690_s22 + $0x18] sm:$0xff] (%p49_p3)  ;;  %v133_v4 = vld [vmem:[%s690_s22 + $0x80] sm:$0xff] (%p49_p3) }
  0x11   : > { %130 = vst [vmem:[%s695_s23 + $0x10] sm:$0xff] %v129_v2  ;;  %v135_v5 = vld [vmem:[%s690_s22 + $0x88] sm:$0xff]  ;;  %132 = vst [vmem:[%s695_s23 + $0x18] sm:$0xff] %v131_v3  ;;  %v137_v6 = vld [vmem:[%s690_s22 + $0x90] sm:$0xff] }
  0x12   : > { %134 = vst [vmem:[%s695_s23 + $0x20] sm:$0xff] %v133_v4  ;;  %136 = vst [vmem:[%s695_s23 + $0x28] sm:$0xff] %v135_v5  ;;  %v139_v7 = vld [vmem:[%s690_s22 + $0x98] sm:$0xff]  ;;  %v141_v8 = vld [vmem:[%s690_s22 + $0x100] sm:$0xff] }
  0x13   : > { %138 = vst [vmem:[%s695_s23 + $0x30] sm:$0xff] %v137_v6  ;;  %140 = vst [vmem:[%s695_s23 + $0x38] sm:$0xff] %v139_v7  ;;  %v143_v9 = vld [vmem:[%s690_s22 + $0x108] sm:$0xff]  ;;  %v145_v10 = vld [vmem:[%s690_s22 + $0x110] sm:$0xff] }
  0x14   : > { %142 = vst [vmem:[%s695_s23 + $0x40] sm:$0xff] %v141_v8  ;;  %v147_v11 = vld [vmem:[%s690_s22 + $0x118] sm:$0xff]  ;;  %144 = vst [vmem:[%s695_s23 + $0x48] sm:$0xff] %v143_v9  ;;  %v149_v12 = vld [vmem:[%s690_s22 + $0x180] sm:$0xff] }
  0x15   : > { %146 = vst [vmem:[%s695_s23 + $0x50] sm:$0xff] %v145_v10  ;;  %148 = vst [vmem:[%s695_s23 + $0x58] sm:$0xff] %v147_v11  ;;  %v151_v13 = vld [vmem:[%s690_s22 + $0x188] sm:$0xff]  ;;  %v153_v14 = vld [vmem:[%s690_s22 + $0x190] sm:$0xff] }
  0x16   : > { %150 = vst [vmem:[%s695_s23 + $0x60] sm:$0xff] %v149_v12  ;;  %152 = vst [vmem:[%s695_s23 + $0x68] sm:$0xff] %v151_v13  ;;  %v155_v15 = vld [vmem:[%s690_s22 + $0x198] sm:$0xff]  ;;  %v157_v16 = vld [vmem:[%s690_s22 + $0x200] sm:$0xff] }
  0x17   : > { %154 = vst [vmem:[%s695_s23 + $0x70] sm:$0xff] %v153_v14  ;;  %v159_v17 = vld [vmem:[%s690_s22 + $0x208] sm:$0xff]  ;;  %156 = vst [vmem:[%s695_s23 + $0x78] sm:$0xff] %v155_v15  ;;  %v161_v18 = vld [vmem:[%s690_s22 + $0x210] sm:$0xff] }
  0x18   : > { %158 = vst [vmem:[%s695_s23 + $0x80] sm:$0xff] %v157_v16  ;;  %160 = vst [vmem:[%s695_s23 + $0x88] sm:$0xff] %v159_v17  ;;  %v163_v19 = vld [vmem:[%s690_s22 + $0x218] sm:$0xff]  ;;  %v165_v20 = vld [vmem:[%s690_s22 + $0x280] sm:$0xff] }
  0x19   : > { %162 = vst [vmem:[%s695_s23 + $0x90] sm:$0xff] %v161_v18  ;;  %164 = vst [vmem:[%s695_s23 + $0x98] sm:$0xff] %v163_v19  ;;  %v167_v21 = vld [vmem:[%s690_s22 + $0x288] sm:$0xff]  ;;  %v169_v22 = vld [vmem:[%s690_s22 + $0x290] sm:$0xff] }
  0x1a   : > { %166 = vst [vmem:[%s695_s23 + $0xa0] sm:$0xff] %v165_v20  ;;  %v171_v23 = vld [vmem:[%s690_s22 + $0x298] sm:$0xff]  ;;  %168 = vst [vmem:[%s695_s23 + $0xa8] sm:$0xff] %v167_v21  ;;  %v173_v24 = vld [vmem:[%s690_s22 + $0x300] sm:$0xff] }
  0x1b   : > { %170 = vst [vmem:[%s695_s23 + $0xb0] sm:$0xff] %v169_v22  ;;  %172 = vst [vmem:[%s695_s23 + $0xb8] sm:$0xff] %v171_v23  ;;  %v175_v25 = vld [vmem:[%s690_s22 + $0x308] sm:$0xff]  ;;  %v177_v26 = vld [vmem:[%s690_s22 + $0x310] sm:$0xff] }
  0x1c   : > { %174 = vst [vmem:[%s695_s23 + $0xc0] sm:$0xff] %v173_v24  ;;  %176 = vst [vmem:[%s695_s23 + $0xc8] sm:$0xff] %v175_v25  ;;  %v179_v27 = vld [vmem:[%s690_s22 + $0x318] sm:$0xff]  ;;  %v181_v28 = vld [vmem:[%s690_s22 + $0x380] sm:$0xff] }
  0x1d   : > { %178 = vst [vmem:[%s695_s23 + $0xd0] sm:$0xff] %v177_v26  ;;  %v183_v29 = vld [vmem:[%s690_s22 + $0x388] sm:$0xff]  ;;  %180 = vst [vmem:[%s695_s23 + $0xd8] sm:$0xff] %v179_v27  ;;  %v185_v30 = vld [vmem:[%s690_s22 + $0x390] sm:$0xff] }
  0x1e   : > { %182 = vst [vmem:[%s695_s23 + $0xe0] sm:$0xff] %v181_v28  ;;  %184 = vst [vmem:[%s695_s23 + $0xe8] sm:$0xff] %v183_v29  ;;  %v187_v31 = vld [vmem:[%s690_s22 + $0x398] sm:$0xff]  ;;  %v189_v32 = vld [vmem:[%s690_s22 + $0x400] sm:$0xff] }
  0x1f   : > { %186 = vst [vmem:[%s695_s23 + $0xf0] sm:$0xff] %v185_v30  ;;  %188 = vst [vmem:[%s695_s23 + $0xf8] sm:$0xff] %v187_v31  ;;  %v191_v33 = vld [vmem:[%s690_s22 + $0x408] sm:$0xff]  ;;  %v193_v34 = vld [vmem:[%s690_s22 + $0x410] sm:$0xff] }
  0x20   : > { %190 = vst [vmem:[%s695_s23 + $0x100] sm:$0xff] %v189_v32  ;;  %v195_v35 = vld [vmem:[%s690_s22 + $0x418] sm:$0xff]  ;;  %192 = vst [vmem:[%s695_s23 + $0x108] sm:$0xff] %v191_v33  ;;  %v197_v36 = vld [vmem:[%s690_s22 + $0x480] sm:$0xff] }
  0x21   : > { %194 = vst [vmem:[%s695_s23 + $0x110] sm:$0xff] %v193_v34  ;;  %196 = vst [vmem:[%s695_s23 + $0x118] sm:$0xff] %v195_v35  ;;  %v199_v37 = vld [vmem:[%s690_s22 + $0x488] sm:$0xff]  ;;  %v201_v38 = vld [vmem:[%s690_s22 + $0x490] sm:$0xff] }
  0x22   : > { %198 = vst [vmem:[%s695_s23 + $0x120] sm:$0xff] %v197_v36  ;;  %200 = vst [vmem:[%s695_s23 + $0x128] sm:$0xff] %v199_v37  ;;  %v203_v39 = vld [vmem:[%s690_s22 + $0x498] sm:$0xff]  ;;  %v205_v40 = vld [vmem:[%s690_s22 + $0x500] sm:$0xff] }
  0x23   : > { %202 = vst [vmem:[%s695_s23 + $0x130] sm:$0xff] %v201_v38  ;;  %v207_v41 = vld [vmem:[%s690_s22 + $0x508] sm:$0xff]  ;;  %204 = vst [vmem:[%s695_s23 + $0x138] sm:$0xff] %v203_v39  ;;  %v209_v42 = vld [vmem:[%s690_s22 + $0x510] sm:$0xff] }
  0x24   : > { %206 = vst [vmem:[%s695_s23 + $0x140] sm:$0xff] %v205_v40  ;;  %208 = vst [vmem:[%s695_s23 + $0x148] sm:$0xff] %v207_v41  ;;  %v211_v43 = vld [vmem:[%s690_s22 + $0x518] sm:$0xff]  ;;  %v213_v44 = vld [vmem:[%s690_s22 + $0x580] sm:$0xff] }
  0x25   : > { %210 = vst [vmem:[%s695_s23 + $0x150] sm:$0xff] %v209_v42  ;;  %212 = vst [vmem:[%s695_s23 + $0x158] sm:$0xff] %v211_v43  ;;  %v215_v45 = vld [vmem:[%s690_s22 + $0x588] sm:$0xff]  ;;  %v217_v46 = vld [vmem:[%s690_s22 + $0x590] sm:$0xff] }
  0x26   : > { %214 = vst [vmem:[%s695_s23 + $0x160] sm:$0xff] %v213_v44  ;;  %v219_v47 = vld [vmem:[%s690_s22 + $0x598] sm:$0xff]  ;;  %216 = vst [vmem:[%s695_s23 + $0x168] sm:$0xff] %v215_v45  ;;  %v221_v48 = vld [vmem:[%s690_s22 + $0x600] sm:$0xff] }
  0x27   : > { %218 = vst [vmem:[%s695_s23 + $0x170] sm:$0xff] %v217_v46  ;;  %220 = vst [vmem:[%s695_s23 + $0x178] sm:$0xff] %v219_v47  ;;  %v223_v49 = vld [vmem:[%s690_s22 + $0x608] sm:$0xff]  ;;  %v225_v50 = vld [vmem:[%s690_s22 + $0x610] sm:$0xff] }
  0x28   : > { %222 = vst [vmem:[%s695_s23 + $0x180] sm:$0xff] %v221_v48  ;;  %224 = vst [vmem:[%s695_s23 + $0x188] sm:$0xff] %v223_v49  ;;  %v227_v51 = vld [vmem:[%s690_s22 + $0x618] sm:$0xff]  ;;  %v229_v52 = vld [vmem:[%s690_s22 + $0x680] sm:$0xff] }
  0x29   : > { %226 = vst [vmem:[%s695_s23 + $0x190] sm:$0xff] %v225_v50  ;;  %v231_v53 = vld [vmem:[%s690_s22 + $0x688] sm:$0xff]  ;;  %228 = vst [vmem:[%s695_s23 + $0x198] sm:$0xff] %v227_v51  ;;  %v233_v54 = vld [vmem:[%s690_s22 + $0x690] sm:$0xff] }
  0x2a   : > { %230 = vst [vmem:[%s695_s23 + $0x1a0] sm:$0xff] %v229_v52  ;;  %232 = vst [vmem:[%s695_s23 + $0x1a8] sm:$0xff] %v231_v53  ;;  %v235_v55 = vld [vmem:[%s690_s22 + $0x698] sm:$0xff]  ;;  %v237_v56 = vld [vmem:[%s690_s22 + $0x700] sm:$0xff] }
  0x2b   : > { %234 = vst [vmem:[%s695_s23 + $0x1b0] sm:$0xff] %v233_v54  ;;  %236 = vst [vmem:[%s695_s23 + $0x1b8] sm:$0xff] %v235_v55  ;;  %v239_v57 = vld [vmem:[%s690_s22 + $0x708] sm:$0xff]  ;;  %v241_v58 = vld [vmem:[%s690_s22 + $0x710] sm:$0xff] }
  0x2c   : > { %238 = vst [vmem:[%s695_s23 + $0x1c0] sm:$0xff] %v237_v56  ;;  %v243_v59 = vld [vmem:[%s690_s22 + $0x718] sm:$0xff]  ;;  %240 = vst [vmem:[%s695_s23 + $0x1c8] sm:$0xff] %v239_v57  ;;  %v245_v60 = vld [vmem:[%s690_s22 + $0x780] sm:$0xff] }
  0x2d   : > { %242 = vst [vmem:[%s695_s23 + $0x1d0] sm:$0xff] %v241_v58  ;;  %244 = vst [vmem:[%s695_s23 + $0x1d8] sm:$0xff] %v243_v59  ;;  %v247_v61 = vld [vmem:[%s690_s22 + $0x788] sm:$0xff]  ;;  %v249_v62 = vld [vmem:[%s690_s22 + $0x790] sm:$0xff] }
  0x2e   : > { %246 = vst [vmem:[%s695_s23 + $0x1e0] sm:$0xff] %v245_v60  ;;  %248 = vst [vmem:[%s695_s23 + $0x1e8] sm:$0xff] %v247_v61  ;;  %v251_v63 = vld [vmem:[%s690_s22 + $0x798] sm:$0xff] }
  0x2f   : > { %250 = vst [vmem:[%s695_s23 + $0x1f0] sm:$0xff] %v249_v62  ;;  %252 = vst [vmem:[%s695_s23 + $0x1f8] sm:$0xff] %v251_v63 }
  0x30 PF: > { %p584_p5 = scmp.ge.s32.totalorder %s638_s11, 1  ;;  %p257_p6 = scmp.lt.s32.totalorder %s638_s11, 5 }
  0x32   : > { %p258_p7 = pnand %p584_p5, %p257_p6 }
  0x33   : > { %s264_s24 = sand.u32 (!%p258_p7), 1, %s630_s9   ;;  %s586_s29 = sshll.u32 (!%p258_p7), %s577_s12, 2 }
  0x34   : > { %261 = sbr.rel (%p258_p7) target bundleno = 291 (0x123), region = 47  ;;  %s585_s25 = sshll.u32 (!%p258_p7), %s264_s24, 9 }
  0x35   : > { %s825_s26 = scalar_lea.vmem (!%p258_p7), [#allocation2], %s585_s25  ;;  %p287_p8 = scmp.lt.s32.totalorder (!%p258_p7), %s586_s29, 15 }
  0x39   : > { %v640_v0 = vmov 0.0   ;;  %v354_v1 = vld [vmem:[%s825_s26 + $0x1e8] sm:$0xff]  ;;  %v356_v2 = vld [vmem:[%s825_s26 + $0x1f8] sm:$0xff]  ;;  %v353_v3 = vld [vmem:[%s825_s26 + $0x1e0] sm:$0xff]  ;;  %s916_s29 = smov (!%p287_p8, %s586_s29), 15 }
  0x3a   : > { %421 = vmatprep.mubr.f32.mxu0 %v640_v0  ;;  %492 = vmatprep.mubr.f32.mxu1 %v640_v0  ;;  %v355_v4 = vld [vmem:[%s825_s26 + $0x1f0] sm:$0xff]  ;;  %v350_v5 = vld [vmem:[%s825_s26 + $0x1c8] sm:$0xff]  ;;  %v352_v6 = vld [vmem:[%s825_s26 + $0x1d8] sm:$0xff]  ;;  %s587_s30 = sshll.u32 %s916_s29, 3 }
  0x3b   : > { %357 = vmatprep.subr.mxu0 %v354_v1  ;;  %428 = vmatprep.subr.mxu1 %v356_v2  ;;  %v349_v7 = vld [vmem:[%s825_s26 + $0x1c0] sm:$0xff]  ;;  %v351_v8 = vld [vmem:[%s825_s26 + $0x1d0] sm:$0xff]  ;;  %v346_v9 = vld [vmem:[%s825_s26 + $0x1a8] sm:$0xff]  ;;  %s290_s5 = scalar_lea.vmem %s911_s2, %s587_s30 }
  0x3c   : > { %358 = vmatpush1.msra.mxu0 %v353_v3  ;;  %429 = vmatpush1.msra.mxu1 %v355_v4  ;;  %v348_v10 = vld [vmem:[%s825_s26 + $0x1b8] sm:$0xff]  ;;  %v345_v11 = vld [vmem:[%s825_s26 + $0x1a0] sm:$0xff]  ;;  %v347_v12 = vld [vmem:[%s825_s26 + $0x1b0] sm:$0xff] }
  0x3d   : > { %359 = vmatprep.subr.mxu0 %v350_v5  ;;  %430 = vmatprep.subr.mxu1 %v352_v6  ;;  %v342_v13 = vld [vmem:[%s825_s26 + $0x188] sm:$0xff]  ;;  %v344_v14 = vld [vmem:[%s825_s26 + $0x198] sm:$0xff]  ;;  %v341_v15 = vld [vmem:[%s825_s26 + $0x180] sm:$0xff] }
  0x3e   : > { %360 = vmatpush1.msra.mxu0 %v349_v7  ;;  %431 = vmatpush1.msra.mxu1 %v351_v8  ;;  %v343_v16 = vld [vmem:[%s825_s26 + $0x190] sm:$0xff]  ;;  %v338_v17 = vld [vmem:[%s825_s26 + $0x168] sm:$0xff]  ;;  %v340_v18 = vld [vmem:[%s825_s26 + $0x178] sm:$0xff] }
  0x3f   : > { %361 = vmatprep.subr.mxu0 %v346_v9  ;;  %432 = vmatprep.subr.mxu1 %v348_v10  ;;  %v337_v19 = vld [vmem:[%s825_s26 + $0x160] sm:$0xff]  ;;  %v339_v20 = vld [vmem:[%s825_s26 + $0x170] sm:$0xff]  ;;  %v334_v21 = vld [vmem:[%s825_s26 + $0x148] sm:$0xff] }
  0x40   : > { %362 = vmatpush1.msra.mxu0 %v345_v11  ;;  %433 = vmatpush1.msra.mxu1 %v347_v12  ;;  %v336_v22 = vld [vmem:[%s825_s26 + $0x158] sm:$0xff]  ;;  %v333_v23 = vld [vmem:[%s825_s26 + $0x140] sm:$0xff]  ;;  %v335_v24 = vld [vmem:[%s825_s26 + $0x150] sm:$0xff] }
  0x41   : > { %363 = vmatprep.subr.mxu0 %v342_v13  ;;  %434 = vmatprep.subr.mxu1 %v344_v14  ;;  %v330_v25 = vld [vmem:[%s825_s26 + $0x128] sm:$0xff]  ;;  %v332_v26 = vld [vmem:[%s825_s26 + $0x138] sm:$0xff]  ;;  %v329_v27 = vld [vmem:[%s825_s26 + $0x120] sm:$0xff] }
  0x42   : > { %364 = vmatpush1.msra.mxu0 %v341_v15  ;;  %435 = vmatpush1.msra.mxu1 %v343_v16  ;;  %v331_v28 = vld [vmem:[%s825_s26 + $0x130] sm:$0xff]  ;;  %v326_v29 = vld [vmem:[%s825_s26 + $0x108] sm:$0xff]  ;;  %v328_v30 = vld [vmem:[%s825_s26 + $0x118] sm:$0xff] }
  0x43   : > { %365 = vmatprep.subr.mxu0 %v338_v17  ;;  %436 = vmatprep.subr.mxu1 %v340_v18  ;;  %v325_v31 = vld [vmem:[%s825_s26 + $0x100] sm:$0xff]  ;;  %v327_v32 = vld [vmem:[%s825_s26 + $0x110] sm:$0xff]  ;;  %v322_v33 = vld [vmem:[%s825_s26 + $0xe8] sm:$0xff] }
  0x44   : > { %366 = vmatpush1.msra.mxu0 %v337_v19  ;;  %437 = vmatpush1.msra.mxu1 %v339_v20  ;;  %v324_v34 = vld [vmem:[%s825_s26 + $0xf8] sm:$0xff]  ;;  %v321_v35 = vld [vmem:[%s825_s26 + $0xe0] sm:$0xff]  ;;  %v323_v36 = vld [vmem:[%s825_s26 + $0xf0] sm:$0xff] }
  0x45   : > { %367 = vmatprep.subr.mxu0 %v334_v21  ;;  %438 = vmatprep.subr.mxu1 %v336_v22  ;;  %v318_v37 = vld [vmem:[%s825_s26 + $0xc8] sm:$0xff]  ;;  %v320_v38 = vld [vmem:[%s825_s26 + $0xd8] sm:$0xff]  ;;  %v317_v39 = vld [vmem:[%s825_s26 + $0xc0] sm:$0xff] }
  0x46   : > { %368 = vmatpush1.msra.mxu0 %v333_v23  ;;  %439 = vmatpush1.msra.mxu1 %v335_v24  ;;  %v319_v40 = vld [vmem:[%s825_s26 + $0xd0] sm:$0xff]  ;;  %v314_v41 = vld [vmem:[%s825_s26 + $0xa8] sm:$0xff]  ;;  %v316_v42 = vld [vmem:[%s825_s26 + $0xb8] sm:$0xff] }
  0x47   : > { %369 = vmatprep.subr.mxu0 %v330_v25  ;;  %440 = vmatprep.subr.mxu1 %v332_v26  ;;  %v313_v43 = vld [vmem:[%s825_s26 + $0xa0] sm:$0xff]  ;;  %v315_v44 = vld [vmem:[%s825_s26 + $0xb0] sm:$0xff]  ;;  %v310_v45 = vld [vmem:[%s825_s26 + $0x88] sm:$0xff] }
  0x48   : > { %370 = vmatpush1.msra.mxu0 %v329_v27  ;;  %441 = vmatpush1.msra.mxu1 %v331_v28  ;;  %v312_v46 = vld [vmem:[%s825_s26 + $0x98] sm:$0xff]  ;;  %v309_v47 = vld [vmem:[%s825_s26 + $0x80] sm:$0xff]  ;;  %v311_v48 = vld [vmem:[%s825_s26 + $0x90] sm:$0xff] }
  0x49   : > { %371 = vmatprep.subr.mxu0 %v326_v29  ;;  %442 = vmatprep.subr.mxu1 %v328_v30  ;;  %v306_v49 = vld [vmem:[%s825_s26 + $0x68] sm:$0xff]  ;;  %v308_v50 = vld [vmem:[%s825_s26 + $0x78] sm:$0xff]  ;;  %v305_v51 = vld [vmem:[%s825_s26 + $0x60] sm:$0xff] }
  0x4a   : > { %372 = vmatpush1.msra.mxu0 %v325_v31  ;;  %443 = vmatpush1.msra.mxu1 %v327_v32  ;;  %v307_v52 = vld [vmem:[%s825_s26 + $0x70] sm:$0xff]  ;;  %v302_v53 = vld [vmem:[%s825_s26 + $0x48] sm:$0xff]  ;;  %v304_v54 = vld [vmem:[%s825_s26 + $0x58] sm:$0xff] }
  0x4b   : > { %373 = vmatprep.subr.mxu0 %v322_v33  ;;  %444 = vmatprep.subr.mxu1 %v324_v34  ;;  %v301_v55 = vld [vmem:[%s825_s26 + $0x40] sm:$0xff]  ;;  %v303_v56 = vld [vmem:[%s825_s26 + $0x50] sm:$0xff]  ;;  %v298_v57 = vld [vmem:[%s825_s26 + $0x28] sm:$0xff] }
  0x4c   : > { %374 = vmatpush1.msra.mxu0 %v321_v35  ;;  %445 = vmatpush1.msra.mxu1 %v323_v36  ;;  %v300_v58 = vld [vmem:[%s825_s26 + $0x38] sm:$0xff]  ;;  %v297_v59 = vld [vmem:[%s825_s26 + $0x20] sm:$0xff]  ;;  %v299_v60 = vld [vmem:[%s825_s26 + $0x30] sm:$0xff] }
  0x4d   : > { %375 = vmatprep.subr.mxu0 %v318_v37  ;;  %446 = vmatprep.subr.mxu1 %v320_v38  ;;  %v294_v61 = vld [vmem:[%s825_s26 + $0x8] sm:$0xff]  ;;  %v296_v62 = vld [vmem:[%s825_s26 + $0x18] sm:$0xff]  ;;  %v293_v63 = vld [vmem:[%s825_s26] sm:$0xff] }
  0x4e   : > { %376 = vmatpush1.msra.mxu0 %v317_v39  ;;  %447 = vmatpush1.msra.mxu1 %v319_v40  ;;  %v295_v0 = vld [vmem:[%s825_s26 + $0x10] sm:$0xff]  ;;  %v292_v1 = vld [vmem:[%s909_s0] sm:$0xff] }
  0x4f   : > { %377 = vmatprep.subr.mxu0 %v314_v41  ;;  %448 = vmatprep.subr.mxu1 %v316_v42 }
  0x50   : > { %378 = vmatpush1.msra.mxu0 %v313_v43  ;;  %449 = vmatpush1.msra.mxu1 %v315_v44 }
  0x51   : > { %379 = vmatprep.subr.mxu0 %v310_v45  ;;  %450 = vmatprep.subr.mxu1 %v312_v46 }
  0x52   : > { %380 = vmatpush1.msra.mxu0 %v309_v47  ;;  %451 = vmatpush1.msra.mxu1 %v311_v48 }
  0x53   : > { %381 = vmatprep.subr.mxu0 %v306_v49  ;;  %452 = vmatprep.subr.mxu1 %v308_v50 }
  0x54   : > { %382 = vmatpush1.msra.mxu0 %v305_v51  ;;  %453 = vmatpush1.msra.mxu1 %v307_v52 }
  0x55   : > { %383 = vmatprep.subr.mxu0 %v302_v53  ;;  %454 = vmatprep.subr.mxu1 %v304_v54 }
  0x56   : > { %384 = vmatpush1.msra.mxu0 %v301_v55  ;;  %455 = vmatpush1.msra.mxu1 %v303_v56 }
  0x57   : > { %385 = vmatprep.subr.mxu0 %v298_v57  ;;  %456 = vmatprep.subr.mxu1 %v300_v58 }
  0x58   : > { %386 = vmatpush1.msra.mxu0 %v297_v59  ;;  %457 = vmatpush1.msra.mxu1 %v299_v60 }
  0x59   : > { %387 = vmatprep.subr.mxu0 %v294_v61  ;;  %458 = vmatprep.subr.mxu1 %v296_v62 }
  0x5a   : > { %388 = vmatpush1.msra.mxu0 %v293_v63  ;;  %459 = vmatpush1.msra.mxu1 %v295_v0 }
  0x5b   : > { %422 = vmatmul.mubr.f32.vlgmr.msra.gmra.mxu0 %v292_v1  ;;  %493 = vmatmul.mubr.f32.vlgmr.msra.gmra.mxu1 %v292_v1 }
 0x11b   : > { %v423_v2 = vpop.f32.mrf.mxu0  ;;  %v494_v3 = vpop.f32.mrf.mxu1 }
 0x11c   : > { %vm499_vm0 = vcmp.gt.f32.partialorder %v423_v2, 0.0  ;;  %v503_v4 = vmul.f32 0.2, %v423_v2  ;;  %vm501_vm1 = vcmp.gt.f32.partialorder %v494_v3, 0.0  ;;  %v505_v5 = vmul.f32 0.2, %v494_v3 }
 0x11d   : > { %v425_v6 = vpop.f32.mrf.mxu0  ;;  %v496_v7 = vpop.f32.mrf.mxu1 }
 0x11e   : > { %v507_v8 = vsel %vm499_vm0, %v423_v2, %v503_v4  ;;  %v509_v9 = vsel %vm501_vm1, %v494_v3, %v505_v5  ;;  %vm500_vm2 = vcmp.gt.f32.partialorder %v425_v6, 0.0  ;;  %v504_v10 = vmul.f32 0.2, %v425_v6 }
 0x11f   : > { %511 = vst [vmem:[%s290_s5] sm:$0xff] %v507_v8  ;;  %513 = vst [vmem:[%s290_s5 + $0x10] sm:$0xff] %v509_v9  ;;  %vm502_vm3 = vcmp.gt.f32.partialorder %v496_v7, 0.0  ;;  %v506_v11 = vmul.f32 0.2, %v496_v7 }
 0x120   : > { %v508_v12 = vsel %vm500_vm2, %v425_v6, %v504_v10 }
 0x121   : > { %512 = vst [vmem:[%s290_s5 + $0x8] sm:$0xff] %v508_v12  ;;  %v510_v13 = vsel %vm502_vm3, %v496_v7, %v506_v11 }
 0x122   : > { %514 = vst [vmem:[%s290_s5 + $0x18] sm:$0xff] %v510_v13 }
 0x123 PF: > { %p9_p9 = scmp.ge.s32.totalorder %s673_s13, 6   ;;  %s912_s9 = smov %s634_s10 }
 0x124   : > { %s913_s10 = smov %s682_s16  ;;  %s914_s11 = smov %s673_s13 }
 0x125   :  { %11 = sbr.rel (!%p9_p9) target bundleno = 2 (0x2), region = 86 }

// kernel: discriminator_forward.5
= control target key start
LH: loop header
LB: loop body
LE: loop exit
PB: predicated region body
PF: predicated region fallthrough
CT: control target
= control target key end

     0   :  { %v379_v3 = vmov 0.0   ;;  %s668_s1 = inlined_call_operand.vmem [shape: f32[128,512], index: 1, kind: input, shape index: {}]   ;;  %s669_s0 = inlined_call_operand.vmem [shape: f32[16,128], index: 0, kind: input, shape index: {}]   ;;  %s670_s2 = inlined_call_operand.vmem [shape: f32[16,1], index: 2, kind: input, shape index: {}]   ;;  %s671_s3 = inlined_call_operand.vmem [shape: f32[16,1], index: 3, kind: input, shape index: {}]   ;;  %s672_s4 = inlined_call_operand.vmem [shape: f32[16,512], index: 4, kind: output, shape index: {}]  }
   0x1   :  { %v80_v0 = vld [vmem:[%s668_s1 + $0x1e8] sm:$0xff]  ;;  %v79_v1 = vld [vmem:[%s668_s1 + $0x1e0] sm:$0xff]  ;;  %147 = vmatprep.mubr.f32.mxu0 %v379_v3  ;;  %224 = vmatprep.mubr.f32.mxu1 %v379_v3  ;;  %v82_v4 = vld [vmem:[%s668_s1 + $0x1f8] sm:$0xff] }
   0x2   :  { %v76_v2 = vld [vmem:[%s668_s1 + $0x1c8] sm:$0xff]  ;;  %83 = vmatprep.subr.mxu0 %v80_v0  ;;  %v75_v5 = vld [vmem:[%s668_s1 + $0x1c0] sm:$0xff]  ;;  %v81_v6 = vld [vmem:[%s668_s1 + $0x1f0] sm:$0xff]  ;;  %160 = vmatprep.subr.mxu1 %v82_v4  ;;  %v380_v4 = vmov 0  }
   0x3   :  { %84 = vmatpush1.msra.mxu0 %v79_v1  ;;  %v72_v7 = vld [vmem:[%s668_s1 + $0x1a8] sm:$0xff]  ;;  %v78_v8 = vld [vmem:[%s668_s1 + $0x1d8] sm:$0xff]  ;;  %161 = vmatpush1.msra.mxu1 %v81_v6  ;;  %v71_v9 = vld [vmem:[%s668_s1 + $0x1a0] sm:$0xff] }
   0x4   :  { %85 = vmatprep.subr.mxu0 %v76_v2  ;;  %v77_v10 = vld [vmem:[%s668_s1 + $0x1d0] sm:$0xff]  ;;  %v74_v11 = vld [vmem:[%s668_s1 + $0x1b8] sm:$0xff]  ;;  %162 = vmatprep.subr.mxu1 %v78_v8  ;;  %v68_v12 = vld [vmem:[%s668_s1 + $0x188] sm:$0xff] }
   0x5   :  { %86 = vmatpush1.msra.mxu0 %v75_v5  ;;  %v73_v13 = vld [vmem:[%s668_s1 + $0x1b0] sm:$0xff]  ;;  %163 = vmatpush1.msra.mxu1 %v77_v10  ;;  %v67_v14 = vld [vmem:[%s668_s1 + $0x180] sm:$0xff]  ;;  %v70_v15 = vld [vmem:[%s668_s1 + $0x198] sm:$0xff] }
   0x6   :  { %87 = vmatprep.subr.mxu0 %v72_v7  ;;  %164 = vmatprep.subr.mxu1 %v74_v11  ;;  %v64_v16 = vld [vmem:[%s668_s1 + $0x168] sm:$0xff]  ;;  %v69_v17 = vld [vmem:[%s668_s1 + $0x190] sm:$0xff]  ;;  %v63_v18 = vld [vmem:[%s668_s1 + $0x160] sm:$0xff] }
   0x7   :  { %88 = vmatpush1.msra.mxu0 %v71_v9  ;;  %165 = vmatpush1.msra.mxu1 %v73_v13  ;;  %v66_v19 = vld [vmem:[%s668_s1 + $0x178] sm:$0xff]  ;;  %v60_v20 = vld [vmem:[%s668_s1 + $0x148] sm:$0xff]  ;;  %v65_v21 = vld [vmem:[%s668_s1 + $0x170] sm:$0xff] }
   0x8   :  { %89 = vmatprep.subr.mxu0 %v68_v12  ;;  %166 = vmatprep.subr.mxu1 %v70_v15  ;;  %v59_v22 = vld [vmem:[%s668_s1 + $0x140] sm:$0xff]  ;;  %v62_v23 = vld [vmem:[%s668_s1 + $0x158] sm:$0xff]  ;;  %v56_v24 = vld [vmem:[%s668_s1 + $0x128] sm:$0xff] }
   0x9   :  { %90 = vmatpush1.msra.mxu0 %v67_v14  ;;  %167 = vmatpush1.msra.mxu1 %v69_v17  ;;  %v61_v25 = vld [vmem:[%s668_s1 + $0x150] sm:$0xff]  ;;  %v55_v26 = vld [vmem:[%s668_s1 + $0x120] sm:$0xff]  ;;  %v58_v27 = vld [vmem:[%s668_s1 + $0x138] sm:$0xff] }
   0xa   :  { %91 = vmatprep.subr.mxu0 %v64_v16  ;;  %168 = vmatprep.subr.mxu1 %v66_v19  ;;  %v52_v28 = vld [vmem:[%s668_s1 + $0x108] sm:$0xff]  ;;  %v57_v29 = vld [vmem:[%s668_s1 + $0x130] sm:$0xff]  ;;  %v51_v30 = vld [vmem:[%s668_s1 + $0x100] sm:$0xff] }
   0xb   :  { %92 = vmatpush1.msra.mxu0 %v63_v18  ;;  %169 = vmatpush1.msra.mxu1 %v65_v21  ;;  %v54_v31 = vld [vmem:[%s668_s1 + $0x118] sm:$0xff]  ;;  %v48_v32 = vld [vmem:[%s668_s1 + $0xe8] sm:$0xff]  ;;  %v53_v33 = vld [vmem:[%s668_s1 + $0x110] sm:$0xff] }
   0xc   :  { %93 = vmatprep.subr.mxu0 %v60_v20  ;;  %170 = vmatprep.subr.mxu1 %v62_v23  ;;  %v47_v34 = vld [vmem:[%s668_s1 + $0xe0] sm:$0xff]  ;;  %v50_v35 = vld [vmem:[%s668_s1 + $0xf8] sm:$0xff]  ;;  %v44_v36 = vld [vmem:[%s668_s1 + $0xc8] sm:$0xff] }
   0xd   :  { %94 = vmatpush1.msra.mxu0 %v59_v22  ;;  %171 = vmatpush1.msra.mxu1 %v61_v25  ;;  %v49_v37 = vld [vmem:[%s668_s1 + $0xf0] sm:$0xff]  ;;  %v43_v38 = vld [vmem:[%s668_s1 + $0xc0] sm:$0xff]  ;;  %v46_v39 = vld [vmem:[%s668_s1 + $0xd8] sm:$0xff] }
   0xe   :  { %95 = vmatprep.subr.mxu0 %v56_v24  ;;  %172 = vmatprep.subr.mxu1 %v58_v27  ;;  %v40_v40 = vld [vmem:[%s668_s1 + $0xa8] sm:$0xff]  ;;  %v45_v41 = vld [vmem:[%s668_s1 + $0xd0] sm:$0xff]  ;;  %v39_v42 = vld [vmem:[%s668_s1 + $0xa0] sm:$0xff] }
   0xf   :  { %96 = vmatpush1.msra.mxu0 %v55_v26  ;;  %173 = vmatpush1.msra.mxu1 %v57_v29  ;;  %v42_v43 = vld [vmem:[%s668_s1 + $0xb8] sm:$0xff]  ;;  %v36_v44 = vld [vmem:[%s668_s1 + $0x88] sm:$0xff]  ;;  %v41_v45 = vld [vmem:[%s668_s1 + $0xb0] sm:$0xff] }
  0x10   :  { %97 = vmatprep.subr.mxu0 %v52_v28  ;;  %174 = vmatprep.subr.mxu1 %v54_v31  ;;  %v35_v46 = vld [vmem:[%s668_s1 + $0x80] sm:$0xff]  ;;  %v38_v47 = vld [vmem:[%s668_s1 + $0x98] sm:$0xff]  ;;  %v32_v48 = vld [vmem:[%s668_s1 + $0x68] sm:$0xff] }
  0x11   :  { %98 = vmatpush1.msra.mxu0 %v51_v30  ;;  %175 = vmatpush1.msra.mxu1 %v53_v33  ;;  %v37_v49 = vld [vmem:[%s668_s1 + $0x90] sm:$0xff]  ;;  %v31_v50 = vld [vmem:[%s668_s1 + $0x60] sm:$0xff]  ;;  %v34_v51 = vld [vmem:[%s668_s1 + $0x78] sm:$0xff] }
  0x12   :  { %99 = vmatprep.subr.mxu0 %v48_v32  ;;  %176 = vmatprep.subr.mxu1 %v50_v35  ;;  %v28_v52 = vld [vmem:[%s668_s1 + $0x48] sm:$0xff]  ;;  %v33_v53 = vld [vmem:[%s668_s1 + $0x70] sm:$0xff]  ;;  %v27_v54 = vld [vmem:[%s668_s1 + $0x40] sm:$0xff] }
  0x13   :  { %100 = vmatpush1.msra.mxu0 %v47_v34  ;;  %177 = vmatpush1.msra.mxu1 %v49_v37  ;;  %v30_v55 = vld [vmem:[%s668_s1 + $0x58] sm:$0xff]  ;;  %v24_v56 = vld [vmem:[%s668_s1 + $0x28] sm:$0xff]  ;;  %v29_v57 = vld [vmem:[%s668_s1 + $0x50] sm:$0xff] }
  0x14   :  { %101 = vmatprep.subr.mxu0 %v44_v36  ;;  %178 = vmatprep.subr.mxu1 %v46_v39  ;;  %v23_v58 = vld [vmem:[%s668_s1 + $0x20] sm:$0xff]  ;;  %v26_v59 = vld [vmem:[%s668_s1 + $0x38] sm:$0xff]  ;;  %v20_v60 = vld [vmem:[%s668_s1 + $0x8] sm:$0xff] }
  0x15   :  { %102 = vmatpush1.msra.mxu0 %v43_v38  ;;  %179 = vmatpush1.msra.mxu1 %v45_v41  ;;  %v25_v61 = vld [vmem:[%s668_s1 + $0x30] sm:$0xff]  ;;  %v19_v62 = vld [vmem:[%s668_s1] sm:$0xff]  ;;  %v22_v63 = vld [vmem:[%s668_s1 + $0x18] sm:$0xff] }
  0x16   :  { %103 = vmatprep.subr.mxu0 %v40_v40  ;;  %180 = vmatprep.subr.mxu1 %v42_v43  ;;  %v17_v0 = vld [vmem:[%s669_s0] sm:$0xff]  ;;  %v21_v1 = vld [vmem:[%s668_s1 + $0x10] sm:$0xff]  ;;  %v18_v2 = vld [vmem:[%s669_s0 + $0x8] sm:$0xff] }
  0x17   :  { %104 = vmatpush1.msra.mxu0 %v39_v42  ;;  %181 = vmatpush1.msra.mxu1 %v41_v45  ;;  %v296_v25 = vld [vmem:[%s670_s2 + $0x8] sm:$0xff]  ;;  %v315_v26 = vld [vmem:[%s671_s3] sm:$0xff] }
  0x18   :  { %105 = vmatprep.subr.mxu0 %v36_v44  ;;  %182 = vmatprep.subr.mxu1 %v38_v47  ;;  %v295_v27 = vld [vmem:[%s670_s2] sm:$0xff]  ;;  %v316_v35 = vld [vmem:[%s671_s3 + $0x8] sm:$0xff] }
  0x19   :  { %106 = vmatpush1.msra.mxu0 %v35_v46  ;;  %183 = vmatpush1.msra.mxu1 %v37_v49 }
  0x1a   :  { %107 = vmatprep.subr.mxu0 %v32_v48  ;;  %184 = vmatprep.subr.mxu1 %v34_v51 }
  0x1b   :  { %108 = vmatpush1.msra.mxu0 %v31_v50  ;;  %185 = vmatpush1.msra.mxu1 %v33_v53 }
  0x1c   :  { %109 = vmatprep.subr.mxu0 %v28_v52  ;;  %186 = vmatprep.subr.mxu1 %v30_v55 }
  0x1d   :  { %110 = vmatpush1.msra.mxu0 %v27_v54  ;;  %187 = vmatpush1.msra.mxu1 %v29_v57 }
  0x1e   :  { %111 = vmatprep.subr.mxu0 %v24_v56  ;;  %188 = vmatprep.subr.mxu1 %v26_v59 }
  0x1f   :  { %112 = vmatpush1.msra.mxu0 %v23_v58  ;;  %189 = vmatpush1.msra.mxu1 %v25_v61 }
  0x20   :  { %113 = vmatprep.subr.mxu0 %v20_v60  ;;  %190 = vmatprep.subr.mxu1 %v22_v63 }
  0x21   :  { %114 = vmatpush1.msra.mxu0 %v19_v62  ;;  %191 = vmatpush1.msra.mxu1 %v21_v1 }
  0x22   :  { %148 = vmatmul.mubr.f32.vlgmr.msra.gmra.mxu0 %v17_v0  ;;  %225 = vmatmul.mubr.f32.vlgmr.msra.gmra.mxu1 %v17_v0 }
  0x23   :  { %153 = vmatprep.mubr.f32.mxu0 %v379_v3  ;;  %230 = vmatprep.mubr.f32.mxu1 %v379_v3 }
  0x24   :  { %374 = vset.pattern.permute.xlu1 %v380_v4  ;;  %373 = vset.pattern.permute.xlu0 %v380_v4 }
  0x26   :  { %154 = vmatmul.mubr.f32.gmra.mxu0 %v18_v2  ;;  %231 = vmatmul.mubr.f32.gmra.mxu1 %v18_v2 }
  0xe2   :  { %v149_v5 = vpop.f32.mrf.mxu0  ;;  %v226_v6 = vpop.f32.mrf.mxu1 }
  0xe3   :  { %v247_v8 = vmul.f32 %v149_v5, %v149_v5  ;;  %v249_v11 = vmul.f32 %v226_v6, %v226_v6 }
  0xe4   :  { %v151_v7 = vpop.f32.mrf.mxu0  ;;  %v228_v12 = vpop.f32.mrf.mxu1 }
  0xe5   :  { %v237_v9 = vadd.f32 %v151_v7, %v149_v5  ;;  %v248_v10 = vmul.f32 %v151_v7, %v151_v7  ;;  %v250_v19 = vmul.f32 %v228_v12, %v228_v12 }
  0xe6   :  { %v608_v13 = vpop.f32.mrf.mxu0  ;;  %v610_v14 = vpop.f32.mrf.mxu1 }
  0xe7   :  { %v238_v15 = vadd.f32 %v237_v9, %v226_v6  ;;  %v255_v16 = vadd.f32 %v248_v10, %v247_v8  ;;  %v251_v28 = vmul.f32 %v608_v13, %v608_v13  ;;  %v253_v31 = vmul.f32 %v610_v14, %v610_v14 }
  0xe8   :  { %v612_v3 = vpop.f32.mrf.mxu0  ;;  %v616_v21 = vpop.f32.mrf.mxu1 }
  0xe9   :  { %v242_v17 = vadd.f32 %v612_v3, %v608_v13  ;;  %v239_v18 = vadd.f32 %v238_v15, %v228_v12  ;;  %v256_v20 = vadd.f32 %v255_v16, %v249_v11  ;;  %v252_v29 = vmul.f32 %v612_v3, %v612_v3 }
  0xea   :  { %v254_v32 = vmul.f32 %v616_v21, %v616_v21 }
  0xeb   :  { %240 = vadd.xlane.f32.xlu0 %v239_v18  ;;  %v257_v22 = vadd.f32 %v256_v20, %v250_v19  ;;  %v243_v23 = vadd.f32 %v242_v17, %v610_v14  ;;  %v260_v30 = vadd.f32 %v252_v29, %v251_v28 }
  0xed   :  { %258 = vadd.xlane.f32.xlu1 %v257_v22  ;;  %v244_v24 = vadd.f32 %v243_v23, %v616_v21  ;;  %v261_v33 = vadd.f32 %v260_v30, %v253_v31 }
  0xef   :  { %245 = vadd.xlane.f32.xlu0 %v244_v24  ;;  %v262_v34 = vadd.f32 %v261_v33, %v254_v32 }
  0xfe   :  { %304 = vperm.xlu1 %374, %v296_v25  }
 0x102   :  { %319 = vperm.xlu1 %374, %v315_v26  }
 0x105   :  { %299 = vperm.xlu0 %373, %v295_v27  }
 0x126   :  { %263 = vadd.xlane.f32.xlu1 %v262_v34 }
 0x137   :  { %324 = vperm.xlu1 %374, %v316_v35  }
 0x174   :  { %v241_v36 = vpop.xlane.xlu0 %240 }
 0x175   :  { %v265_v37 = vmul.f32 0.001953125, %v241_v36 }
 0x176   :  { %v259_v38 = vpop.xlane.xlu1 %258 }
 0x177   :  { %v267_v39 = vmul.f32 0.001953125, %v259_v38  ;;  %v269_v40 = vmul.f32 %v265_v37, %v265_v37  ;;  %v275_v46 = vsub.f32 %v149_v5, %v265_v37  ;;  %v276_v47 = vsub.f32 %v151_v7, %v265_v37 }
 0x178   :  { %v246_v44 = vpop.xlane.xlu0 %245  ;;  %v277_v48 = vsub.f32 %v226_v6, %v265_v37  ;;  %v278_v49 = vsub.f32 %v228_v12, %v265_v37 }
 0x179   :  { %v271_v41 = vsub.f32 %v267_v39, %v269_v40  ;;  %v266_v10 = vmul.f32 0.001953125, %v246_v44 }
 0x17a   :  { %v305_v45 = vpop.permute.xlu1 %304 }
 0x17b   :  { %v273_v42 = vmax.f32 %v271_v41, 0.0  ;;  %v270_v15 = vmul.f32 %v266_v10, %v266_v10  ;;  %v279_v19 = vsub.f32 %v608_v13, %v266_v10  ;;  %v280_v20 = vsub.f32 %v612_v3, %v266_v10 }
 0x17c   :  { %v281_v22 = vsub.f32 %v610_v14, %v266_v10  ;;  %v282_v23 = vsub.f32 %v616_v21, %v266_v10 }
 0x17d   :  { %v283_v43 = vadd.f32 1e-05, %v273_v42 }
 0x17e   :  { %v320_v60 = vpop.permute.xlu1 %319 }
 0x17f   :  { %375 = vrsqrt.f32 %v283_v43 }
 0x180   :  { %v300_v51 = vpop.permute.xlu0 %299 }
 0x18c   :  { %v376_v50 = vpop.eup %375 }
 0x18d   :  { %v287_v52 = vmul.f32 %v376_v50, %v275_v46  ;;  %v288_v53 = vmul.f32 %v376_v50, %v276_v47  ;;  %v289_v54 = vmul.f32 %v376_v50, %v277_v48  ;;  %v290_v55 = vmul.f32 %v376_v50, %v278_v49 }
 0x18f   :  { %v307_v56 = vmul.f32 %v300_v51, %v287_v52  ;;  %v308_v57 = vmul.f32 %v300_v51, %v288_v53  ;;  %v309_v58 = vmul.f32 %v300_v51, %v289_v54  ;;  %v310_v59 = vmul.f32 %v300_v51, %v290_v55 }
 0x191   :  { %v327_v61 = vadd.f32 %v320_v60, %v307_v56  ;;  %v328_v62 = vadd.f32 %v320_v60, %v308_v57  ;;  %v329_v63 = vadd.f32 %v320_v60, %v309_v58  ;;  %v330_v0 = vadd.f32 %v320_v60, %v310_v59 }
 0x193   :  { %vm335_vm0 = vcmp.gt.f32.partialorder %v327_v61, 0.0  ;;  %vm336_vm1 = vcmp.gt.f32.partialorder %v328_v62, 0.0  ;;  %vm337_vm2 = vcmp.gt.f32.partialorder %v329_v63, 0.0  ;;  %vm338_vm3 = vcmp.gt.f32.partialorder %v330_v0, 0.0 }
 0x194   :  { %v343_v1 = vmul.f32 0.2, %v327_v61  ;;  %v344_v2 = vmul.f32 0.2, %v328_v62  ;;  %v345_v4 = vmul.f32 0.2, %v329_v63 }
 0x195   :  { %v346_v5 = vmul.f32 0.2, %v330_v0 }
 0x196   :  { %v351_v6 = vsel %vm335_vm0, %v327_v61, %v343_v1  ;;  %v352_v7 = vsel %vm336_vm1, %v328_v62, %v344_v2  ;;  %v353_v8 = vsel %vm337_vm2, %v329_v63, %v345_v4 }
 0x197   :  { %v354_v9 = vsel %vm338_vm3, %v330_v0, %v346_v5  ;;  %359 = vst [vmem:[%s672_s4] sm:$0xff] %v351_v6  ;;  %360 = vst [vmem:[%s672_s4 + $0x8] sm:$0xff] %v352_v7 }
 0x198   :  { %361 = vst [vmem:[%s672_s4 + $0x10] sm:$0xff] %v353_v8  ;;  %362 = vst [vmem:[%s672_s4 + $0x18] sm:$0xff] %v354_v9 }
 0x1af   :  { %v264_v11 = vpop.xlane.xlu1 %263 }
 0x1b0   :  { %v268_v12 = vmul.f32 0.001953125, %v264_v11 }
 0x1b2   :  { %v272_v16 = vsub.f32 %v268_v12, %v270_v15 }
 0x1b3   :  { %v325_v33 = vpop.permute.xlu1 %324 }
 0x1b4   :  { %v274_v17 = vmax.f32 %v272_v16, 0.0 }
 0x1b6   :  { %v284_v18 = vadd.f32 1e-05, %v274_v17 }
 0x1b8   :  { %377 = vrsqrt.f32 %v284_v18 }
 0x1c5   :  { %v378_v24 = vpop.eup %377 }
 0x1c6   :  { %v291_v25 = vmul.f32 %v378_v24, %v279_v19  ;;  %v292_v26 = vmul.f32 %v378_v24, %v280_v20  ;;  %v293_v27 = vmul.f32 %v378_v24, %v281_v22  ;;  %v294_v28 = vmul.f32 %v378_v24, %v282_v23 }
 0x1c8   :  { %v311_v29 = vmul.f32 %v305_v45, %v291_v25  ;;  %v312_v30 = vmul.f32 %v305_v45, %v292_v26  ;;  %v313_v31 = vmul.f32 %v305_v45, %v293_v27  ;;  %v314_v32 = vmul.f32 %v305_v45, %v294_v28 }
 0x1ca   :  { %v331_v34 = vadd.f32 %v325_v33, %v311_v29  ;;  %v332_v35 = vadd.f32 %v325_v33, %v312_v30  ;;  %v333_v36 = vadd.f32 %v325_v33, %v313_v31  ;;  %v334_v13 = vadd.f32 %v325_v33, %v314_v32 }
 0x1cc   :  { %vm339_vm4 = vcmp.gt.f32.partialorder %v331_v34, 0.0  ;;  %vm340_vm5 = vcmp.gt.f32.partialorder %v332_v35, 0.0  ;;  %vm341_vm6 = vcmp.gt.f32.partialorder %v333_v36, 0.0  ;;  %vm342_vm7 = vcmp.gt.f32.partialorder %v334_v13, 0.0 }
 0x1cd   :  { %v347_v14 = vmul.f32 0.2, %v331_v34  ;;  %v348_v3 = vmul.f32 0.2, %v332_v35  ;;  %v349_v21 = vmul.f32 0.2, %v333_v36 }
 0x1ce   :  { %v350_v37 = vmul.f32 0.2, %v334_v13 }
 0x1cf   :  { %v355_v38 = vsel %vm339_vm4, %v331_v34, %v347_v14  ;;  %v356_v39 = vsel %vm340_vm5, %v332_v35, %v348_v3  ;;  %v357_v40 = vsel %vm341_vm6, %v333_v36, %v349_v21 }
 0x1d0   :  { %v358_v41 = vsel %vm342_vm7, %v334_v13, %v350_v37  ;;  %363 = vst [vmem:[%s672_s4 + $0x20] sm:$0xff] %v355_v38  ;;  %364 = vst [vmem:[%s672_s4 + $0x28] sm:$0xff] %v356_v39 }
 0x1d1   :  { %365 = vst [vmem:[%s672_s4 + $0x30] sm:$0xff] %v357_v40  ;;  %366 = vst [vmem:[%s672_s4 + $0x38] sm:$0xff] %v358_v41 }

// kernel: discriminator_forward.6
= control target key start
LH: loop header
LB: loop body
LE: loop exit
PB: predicated region body
PF: predicated region fallthrough
CT: control target
= control target key end

     0   :  { %v361_v40 = vmov 0   ;;  %s567_s1 = inlined_call_operand.vmem [shape: f32[256,128], index: 1, kind: input, shape index: {}]   ;;  %s568_s0 = inlined_call_operand.vmem [shape: f32[32,256], index: 0, kind: input, shape index: {}]   ;;  %s569_s2 = inlined_call_operand.vmem [shape: f32[32,1], index: 2, kind: input, shape index: {}]   ;;  %s570_s3 = inlined_call_operand.vmem [shape: f32[32,1], index: 3, kind: input, shape index: {}]   ;;  %s571_s4 = inlined_call_operand.vmem [shape: f32[32,128], index: 4, kind: output, shape index: {}]  }
   0x1   :  { %v56_v0 = vld [vmem:[%s567_s1 + $0xf8] sm:$0xff]  ;;  %v55_v2 = vld [vmem:[%s567_s1 + $0xf0] sm:$0xff]  ;;  %v54_v4 = vld [vmem:[%s567_s1 + $0xe8] sm:$0xff]  ;;  %352 = vset.pattern.permute.xlu1 %v361_v40  ;;  %351 = vset.pattern.permute.xlu0 %v361_v40 }
   0x2   :  { %v40_v1 = vld [vmem:[%s567_s1 + $0x78] sm:$0xff]  ;;  %274 = vmatprep.subr.mxu0 %v56_v0  ;;  %318 = vmatprep.subr.mxu1 %v56_v0  ;;  %v39_v3 = vld [vmem:[%s567_s1 + $0x70] sm:$0xff]  ;;  %v38_v5 = vld [vmem:[%s567_s1 + $0x68] sm:$0xff] }
   0x3   :  { %275 = vmatpush3.msra.mxu0 %v40_v1  ;;  %334 = vmatpush3.msra.mxu1 %v40_v1  ;;  %v53_v6 = vld [vmem:[%s567_s1 + $0xe0] sm:$0xff]  ;;  %v52_v8 = vld [vmem:[%s567_s1 + $0xd8] sm:$0xff]  ;;  %v51_v10 = vld [vmem:[%s567_s1 + $0xd0] sm:$0xff] }
   0x4   :  { %276 = vmatprep.subr.mxu0 %v55_v2  ;;  %319 = vmatprep.subr.mxu1 %v55_v2  ;;  %v37_v7 = vld [vmem:[%s567_s1 + $0x60] sm:$0xff]  ;;  %v36_v9 = vld [vmem:[%s567_s1 + $0x58] sm:$0xff]  ;;  %v35_v11 = vld [vmem:[%s567_s1 + $0x50] sm:$0xff] }
   0x5   :  { %277 = vmatpush3.msra.mxu0 %v39_v3  ;;  %335 = vmatpush3.msra.mxu1 %v39_v3  ;;  %v50_v12 = vld [vmem:[%s567_s1 + $0xc8] sm:$0xff]  ;;  %v49_v14 = vld [vmem:[%s567_s1 + $0xc0] sm:$0xff]  ;;  %v48_v16 = vld [vmem:[%s567_s1 + $0xb8] sm:$0xff] }
   0x6   :  { %278 = vmatprep.subr.mxu0 %v54_v4  ;;  %320 = vmatprep.subr.mxu1 %v54_v4  ;;  %v34_v13 = vld [vmem:[%s567_s1 + $0x48] sm:$0xff]  ;;  %v33_v15 = vld [vmem:[%s567_s1 + $0x40] sm:$0xff]  ;;  %v32_v17 = vld [vmem:[%s567_s1 + $0x38] sm:$0xff] }
   0x7   :  { %279 = vmatpush3.msra.mxu0 %v38_v5  ;;  %336 = vmatpush3.msra.mxu1 %v38_v5  ;;  %v47_v18 = vld [vmem:[%s567_s1 + $0xb0] sm:$0xff]  ;;  %v46_v20 = vld [vmem:[%s567_s1 + $0xa8] sm:$0xff]  ;;  %v45_v22 = vld [vmem:[%s567_s1 + $0xa0] sm:$0xff] }
   0x8   :  { %280 = vmatprep.subr.mxu0 %v53_v6  ;;  %321 = vmatprep.subr.mxu1 %v53_v6  ;;  %v31_v19 = vld [vmem:[%s567_s1 + $0x30] sm:$0xff]  ;;  %v30_v21 = vld [vmem:[%s567_s1 + $0x28] sm:$0xff]  ;;  %v29_v23 = vld [vmem:[%s567_s1 + $0x20] sm:$0xff] }
   0x9   :  { %281 = vmatpush3.msra.mxu0 %v37_v7  ;;  %337 = vmatpush3.msra.mxu1 %v37_v7  ;;  %v44_v24 = vld [vmem:[%s567_s1 + $0x98] sm:$0xff]  ;;  %v43_v26 = vld [vmem:[%s567_s1 + $0x90] sm:$0xff]  ;;  %v42_v28 = vld [vmem:[%s567_s1 + $0x88] sm:$0xff] }
   0xa   :  { %282 = vmatprep.subr.mxu0 %v52_v8  ;;  %322 = vmatprep.subr.mxu1 %v52_v8  ;;  %v28_v25 = vld [vmem:[%s567_s1 + $0x18] sm:$0xff]  ;;  %v27_v27 = vld [vmem:[%s567_s1 + $0x10] sm:$0xff]  ;;  %v26_v29 = vld [vmem:[%s567_s1 + $0x8] sm:$0xff] }
   0xb   :  { %283 = vmatpush3.msra.mxu0 %v36_v9  ;;  %338 = vmatpush3.msra.mxu1 %v36_v9  ;;  %v41_v30 = vld [vmem:[%s567_s1 + $0x80] sm:$0xff]  ;;  %v18_v32 = vld [vmem:[%s568_s0 + $0x8] sm:$0xff]  ;;  %v20_v36 = vld [vmem:[%s568_s0 + $0x18] sm:$0xff] }
   0xc   :  { %284 = vmatprep.subr.mxu0 %v51_v10  ;;  %323 = vmatprep.subr.mxu1 %v51_v10  ;;  %v25_v31 = vld [vmem:[%s567_s1] sm:$0xff]  ;;  %v22_v33 = vld [vmem:[%s568_s0 + $0x28] sm:$0xff]  ;;  %v24_v37 = vld [vmem:[%s568_s0 + $0x38] sm:$0xff] }
   0xd   :  { %285 = vmatpush3.msra.mxu0 %v35_v11  ;;  %339 = vmatpush3.msra.mxu1 %v35_v11  ;;  %v17_v34 = vld [vmem:[%s568_s0] sm:$0xff]  ;;  %v19_v38 = vld [vmem:[%s568_s0 + $0x10] sm:$0xff]  ;;  %v199_v52 = vld [vmem:[%s569_s2 + $0x8] sm:$0xff] }
   0xe   :  { %286 = vmatprep.subr.mxu0 %v50_v12  ;;  %324 = vmatprep.subr.mxu1 %v50_v12  ;;  %v21_v35 = vld [vmem:[%s568_s0 + $0x20] sm:$0xff]  ;;  %v23_v39 = vld [vmem:[%s568_s0 + $0x30] sm:$0xff]  ;;  %v201_v54 = vld [vmem:[%s569_s2 + $0x18] sm:$0xff] }
   0xf   :  { %287 = vmatpush3.msra.mxu0 %v34_v13  ;;  %340 = vmatpush3.msra.mxu1 %v34_v13  ;;  %v200_v53 = vld [vmem:[%s569_s2 + $0x10] sm:$0xff]  ;;  %v226_v55 = vld [vmem:[%s570_s3] sm:$0xff]  ;;  %v227_v56 = vld [vmem:[%s570_s3 + $0x8] sm:$0xff] }
  0x10   :  { %288 = vmatprep.subr.mxu0 %v49_v14  ;;  %325 = vmatprep.subr.mxu1 %v49_v14  ;;  %v198_v57 = vld [vmem:[%s569_s2] sm:$0xff]  ;;  %v228_v58 = vld [vmem:[%s570_s3 + $0x10] sm:$0xff]  ;;  %v229_v0 = vld [vmem:[%s570_s3 + $0x18] sm:$0xff] }
  0x11   :  { %289 = vmatpush3.msra.mxu0 %v33_v15  ;;  %341 = vmatpush3.msra.mxu1 %v33_v15 }
  0x12   :  { %290 = vmatprep.subr.mxu0 %v48_v16  ;;  %326 = vmatprep.subr.mxu1 %v48_v16 }
  0x13   :  { %291 = vmatpush3.msra.mxu0 %v32_v17  ;;  %342 = vmatpush3.msra.mxu1 %v32_v17 }
  0x14   :  { %292 = vmatprep.subr.mxu0 %v47_v18  ;;  %327 = vmatprep.subr.mxu1 %v47_v18 }
  0x15   :  { %293 = vmatpush3.msra.mxu0 %v31_v19  ;;  %343 = vmatpush3.msra.mxu1 %v31_v19 }
  0x16   :  { %294 = vmatprep.subr.mxu0 %v46_v20  ;;  %328 = vmatprep.subr.mxu1 %v46_v20 }
  0x17   :  { %295 = vmatpush3.msra.mxu0 %v30_v21  ;;  %344 = vmatpush3.msra.mxu1 %v30_v21 }
  0x18   :  { %296 = vmatprep.subr.mxu0 %v45_v22  ;;  %329 = vmatprep.subr.mxu1 %v45_v22 }
  0x19   :  { %297 = vmatpush3.msra.mxu0 %v29_v23  ;;  %345 = vmatpush3.msra.mxu1 %v29_v23 }
  0x1a   :  { %298 = vmatprep.subr.mxu0 %v44_v24  ;;  %330 = vmatprep.subr.mxu1 %v44_v24 }
  0x1b   :  { %299 = vmatpush3.msra.mxu0 %v28_v25  ;;  %346 = vmatpush3.msra.mxu1 %v28_v25 }
  0x1c   :  { %300 = vmatprep.subr.mxu0 %v43_v26  ;;  %331 = vmatprep.subr.mxu1 %v43_v26 }
  0x1d   :  { %301 = vmatpush3.msra.mxu0 %v27_v27  ;;  %347 = vmatpush3.msra.mxu1 %v27_v27 }
  0x1e   :  { %302 = vmatprep.subr.mxu0 %v42_v28  ;;  %332 = vmatprep.subr.mxu1 %v42_v28 }
  0x1f   :  { %303 = vmatpush3.msra.mxu0 %v26_v29  ;;  %348 = vmatpush3.msra.mxu1 %v26_v29 }
  0x20   :  { %304 = vmatprep.subr.mxu0 %v41_v30  ;;  %333 = vmatprep.subr.mxu1 %v41_v30 }
  0x21   :  { %305 = vmatpush3.msra.mxu0 %v25_v31  ;;  %349 = vmatpush3.msra.mxu1 %v25_v31 }
  0x22   :  { %121 = vmatprep.mubr.f32.mxu0 %v18_v32  ;;  %131 = vmatprep.mubr.f32.mxu1 %v22_v33 }
  0x23   :  { %122 = vmatmul.mubr.f32.vlgmr.msra.gmra.mxu0 %v17_v34  ;;  %132 = vmatmul.mubr.f32.vlgmr.msra.gmra.mxu1 %v21_v35 }
  0x24   :  { %126 = vmatprep.mubr.f32.mxu0 %v20_v36  ;;  %136 = vmatprep.mubr.f32.mxu1 %v24_v37 }
  0x27   :  { %127 = vmatmul.mubr.f32.gmra.mxu0 %v19_v38  ;;  %137 = vmatmul.mubr.f32.gmra.mxu1 %v23_v39 }
  0xe3   :  { %v306_v41 = vpop.f32.mrf.mxu0  ;;  %v312_v42 = vpop.f32.mrf.mxu1 }
  0xe5   :  { %v307_v43 = vpop.f32.mrf.mxu0  ;;  %v313_v44 = vpop.f32.mrf.mxu1 }
  0xe6   :  { %v507_v45 = vadd.f32 %v307_v43, %v306_v41  ;;  %v509_v46 = vadd.f32 %v313_v44, %v312_v42 }
  0xe7   :  { %v309_v47 = vpop.f32.mrf.mxu0  ;;  %v315_v59 = vpop.f32.mrf.mxu1 }
  0xe8   :  { %146 = vadd.xlane.f32.xlu1 %v509_v46  ;;  %142 = vadd.xlane.f32.xlu0 %v507_v45  ;;  %v150_v48 = vmul.f32 %v507_v45, %v507_v45  ;;  %v152_v51 = vmul.f32 %v509_v46, %v509_v46 }
  0xe9   :  { %v310_v49 = vpop.f32.mrf.mxu0  ;;  %v316_v60 = vpop.f32.mrf.mxu1 }
  0xea   :  { %v515_v50 = vadd.f32 %v310_v49, %v309_v47  ;;  %v541_v61 = vadd.f32 %v316_v60, %v315_v59 }
  0xec   :  { %154 = vadd.xlane.f32.xlu0 %v150_v48  ;;  %v151_v62 = vmul.f32 %v515_v50, %v515_v50  ;;  %v153_v63 = vmul.f32 %v541_v61, %v541_v61 }
  0xf0   :  { %144 = vadd.xlane.f32.xlu0 %v515_v50 }
  0xf4   :  { %158 = vadd.xlane.f32.xlu0 %v152_v51 }
  0xf9   :  { %209 = vperm.xlu1 %352, %v199_v52  }
  0xfd   :  { %214 = vperm.xlu1 %352, %v200_v53  }
 0x101   :  { %219 = vperm.xlu1 %352, %v201_v54  }
 0x105   :  { %232 = vperm.xlu1 %352, %v226_v55  }
 0x109   :  { %237 = vperm.xlu1 %352, %v227_v56  }
 0x10a   :  { %204 = vperm.xlu0 %351, %v198_v57  }
 0x10d   :  { %242 = vperm.xlu1 %352, %v228_v58  }
 0x131   :  { %148 = vadd.xlane.f32.xlu1 %v541_v61 }
 0x135   :  { %156 = vadd.xlane.f32.xlu1 %v151_v62 }
 0x139   :  { %160 = vadd.xlane.f32.xlu1 %v153_v63 }
 0x14a   :  { %247 = vperm.xlu1 %352, %v229_v0  }
 0x171   :  { %v143_v1 = vpop.xlane.xlu0 %142  ;;  %v147_v3 = vpop.xlane.xlu1 %146 }
 0x172   :  { %v162_v2 = vmul.f32 0.0078125, %v143_v1  ;;  %v164_v10 = vmul.f32 0.0078125, %v147_v3 }
 0x174   :  { %v170_v4 = vmul.f32 %v162_v2, %v162_v2  ;;  %v172_v14 = vmul.f32 %v164_v10, %v164_v10  ;;  %v182_v21 = vsub.f32 %v507_v45, %v162_v2  ;;  %v184_v29 = vsub.f32 %v509_v46, %v164_v10 }
 0x175   :  { %v155_v5 = vpop.xlane.xlu0 %154  ;;  %v210_v8 = vpop.permute.xlu1 %209 }
 0x176   :  { %v166_v6 = vmul.f32 0.0078125, %v155_v5 }
 0x178   :  { %v174_v7 = vsub.f32 %v166_v6, %v170_v4 }
 0x179   :  { %v145_v9 = vpop.xlane.xlu0 %144  ;;  %v215_v16 = vpop.permute.xlu1 %214 }
 0x17a   :  { %v178_v11 = vmax.f32 %v174_v7, 0.0  ;;  %v163_v40 = vmul.f32 0.0078125, %v145_v9 }
 0x17c   :  { %v186_v12 = vadd.f32 1e-05, %v178_v11  ;;  %v171_v42 = vmul.f32 %v163_v40, %v163_v40  ;;  %v183_v55 = vsub.f32 %v515_v50, %v163_v40 }
 0x17d   :  { %v159_v13 = vpop.xlane.xlu0 %158  ;;  %v220_v20 = vpop.permute.xlu1 %219 }
 0x17e   :  { %353 = vrsqrt.f32 %v186_v12  ;;  %v168_v15 = vmul.f32 0.0078125, %v159_v13 }
 0x180   :  { %v176_v17 = vsub.f32 %v168_v15, %v172_v14 }
 0x181   :  { %v233_v23 = vpop.permute.xlu1 %232 }
 0x182   :  { %v180_v18 = vmax.f32 %v176_v17, 0.0 }
 0x184   :  { %v188_v19 = vadd.f32 1e-05, %v180_v18 }
 0x185   :  { %v205_v24 = vpop.permute.xlu0 %204  ;;  %v238_v28 = vpop.permute.xlu1 %237 }
 0x186   :  { %355 = vrsqrt.f32 %v188_v19 }
 0x189   :  { %v243_v35 = vpop.permute.xlu1 %242 }
 0x18b   :  { %v354_v22 = vpop.eup %353 }
 0x18c   :  { %v194_v25 = vmul.f32 %v354_v22, %v182_v21 }
 0x18e   :  { %v222_v26 = vmul.f32 %v205_v24, %v194_v25 }
 0x190   :  { %v250_v27 = vadd.f32 %v233_v23, %v222_v26 }
 0x192   :  { %vm254_vm0 = vcmp.gt.f32.partialorder %v250_v27, 0.0  ;;  %v258_v30 = vmul.f32 0.2, %v250_v27 }
 0x193   :  { %v356_v31 = vpop.eup %355 }
 0x194   :  { %v196_v32 = vmul.f32 %v356_v31, %v184_v29  ;;  %v262_v33 = vsel %vm254_vm0, %v250_v27, %v258_v30 }
 0x195   :  { %266 = vst [vmem:[%s571_s4] sm:$0xff] %v262_v33 }
 0x196   :  { %v224_v34 = vmul.f32 %v215_v16, %v196_v32 }
 0x198   :  { %v252_v36 = vadd.f32 %v243_v35, %v224_v34 }
 0x19a   :  { %vm256_vm1 = vcmp.gt.f32.partialorder %v252_v36, 0.0  ;;  %v260_v37 = vmul.f32 0.2, %v252_v36 }
 0x19c   :  { %v264_v38 = vsel %vm256_vm1, %v252_v36, %v260_v37 }
 0x19d   :  { %268 = vst [vmem:[%s571_s4 + $0x10] sm:$0xff] %v264_v38 }
 0x1ba   :  { %v149_v39 = vpop.xlane.xlu1 %148 }
 0x1bb   :  { %v165_v43 = vmul.f32 0.0078125, %v149_v39 }
 0x1bd   :  { %v173_v47 = vmul.f32 %v165_v43, %v165_v43  ;;  %v185_v58 = vsub.f32 %v541_v61, %v165_v43 }
 0x1be   :  { %v157_v41 = vpop.xlane.xlu1 %156 }
 0x1bf   :  { %v167_v44 = vmul.f32 0.0078125, %v157_v41 }
 0x1c1   :  { %v175_v45 = vsub.f32 %v167_v44, %v171_v42 }
 0x1c2   :  { %v161_v46 = vpop.xlane.xlu1 %160 }
 0x1c3   :  { %v179_v48 = vmax.f32 %v175_v45, 0.0  ;;  %v169_v49 = vmul.f32 0.0078125, %v161_v46 }
 0x1c5   :  { %v187_v51 = vadd.f32 1e-05, %v179_v48  ;;  %v177_v52 = vsub.f32 %v169_v49, %v173_v47 }
 0x1c6   :  { %v248_v2 = vpop.permute.xlu1 %247 }
 0x1c7   :  { %357 = vrsqrt.f32 %v187_v51  ;;  %v181_v53 = vmax.f32 %v177_v52, 0.0 }
 0x1c9   :  { %v189_v54 = vadd.f32 1e-05, %v181_v53 }
 0x1cb   :  { %359 = vrsqrt.f32 %v189_v54 }
 0x1d4   :  { %v358_v56 = vpop.eup %357 }
 0x1d5   :  { %v195_v57 = vmul.f32 %v358_v56, %v183_v55 }
 0x1d7   :  { %v223_v59 = vmul.f32 %v210_v8, %v195_v57 }
 0x1d8   :  { %v360_v60 = vpop.eup %359 }
 0x1d9   :  { %v251_v62 = vadd.f32 %v238_v28, %v223_v59  ;;  %v197_v63 = vmul.f32 %v360_v60, %v185_v58 }
 0x1db   :  { %vm255_vm2 = vcmp.gt.f32.partialorder %v251_v62, 0.0  ;;  %v259_v0 = vmul.f32 0.2, %v251_v62  ;;  %v225_v1 = vmul.f32 %v220_v20, %v197_v63 }
 0x1dd   :  { %v263_v3 = vsel %vm255_vm2, %v251_v62, %v259_v0  ;;  %v253_v4 = vadd.f32 %v248_v2, %v225_v1 }
 0x1de   :  { %267 = vst [vmem:[%s571_s4 + $0x8] sm:$0xff] %v263_v3 }
 0x1df   :  { %vm257_vm3 = vcmp.gt.f32.partialorder %v253_v4, 0.0  ;;  %v261_v50 = vmul.f32 0.2, %v253_v4 }
 0x1e1   :  { %v265_v5 = vsel %vm257_vm3, %v253_v4, %v261_v50 }
 0x1e2   :  { %269 = vst [vmem:[%s571_s4 + $0x18] sm:$0xff] %v265_v5 }

// kernel: discriminator_forward.7
= control target key start
LH: loop header
LB: loop body
LE: loop exit
PB: predicated region body
PF: predicated region fallthrough
CT: control target
= control target key end

     0   :  { %s1556_s0 = inlined_call_operand.vmem [shape: f32[64,512], index: 0, kind: input, shape index: {}]   ;;  %s1557_s1 = inlined_call_operand.vmem [shape: f32[512,32], index: 1, kind: input, shape index: {}]   ;;  %s1558_s2 = inlined_call_operand.vmem [shape: f32[64,1], index: 2, kind: input, shape index: {}]   ;;  %s1559_s3 = inlined_call_operand.vmem [shape: f32[64,1], index: 3, kind: input, shape index: {}]   ;;  %s1560_s4 = inlined_call_operand.vmem [shape: f32[64,32], index: 4, kind: input, shape index: {}]   ;;  %s1561_s5 = inlined_call_operand.vmem [shape: f32[32,2], index: 5, kind: input, shape index: {}]   ;;  %s1562_s6 = inlined_call_operand.hbm [shape: f32[1,2], index: 6, kind: output, shape index: {}]  }
   0x1   :  { %v87_v0 = vld [vmem:[%s1557_s1 + $0xf8] sm:$0xff]  ;;  %v86_v4 = vld [vmem:[%s1557_s1 + $0xf0] sm:$0xff]  ;;  %v85_v8 = vld [vmem:[%s1557_s1 + $0xe8] sm:$0xff] }
   0x2   :  { %v119_v1 = vld [vmem:[%s1557_s1 + $0x1f8] sm:$0xff]  ;;  %797 = vmatprep.subr.mxu0 %v87_v0  ;;  %v118_v5 = vld [vmem:[%s1557_s1 + $0x1f0] sm:$0xff]  ;;  %v117_v9 = vld [vmem:[%s1557_s1 + $0x1e8] sm:$0xff] }
   0x3   :  { %v71_v2 = vld [vmem:[%s1557_s1 + $0x78] sm:$0xff]  ;;  %853 = vmatprep.subr.mxu1 %v119_v1  ;;  %v70_v6 = vld [vmem:[%s1557_s1 + $0x70] sm:$0xff]  ;;  %v69_v10 = vld [vmem:[%s1557_s1 + $0x68] sm:$0xff] }
   0x4   :  { %v103_v3 = vld [vmem:[%s1557_s1 + $0x178] sm:$0xff]  ;;  %798 = vmatpush3.msra.mxu0 %v71_v2  ;;  %v102_v7 = vld [vmem:[%s1557_s1 + $0x170] sm:$0xff]  ;;  %v101_v11 = vld [vmem:[%s1557_s1 + $0x168] sm:$0xff] }
   0x5   :  { %854 = vmatpush3.msra.mxu1 %v103_v3  ;;  %799 = vmatprep.subr.mxu0 %v86_v4  ;;  %v84_v12 = vld [vmem:[%s1557_s1 + $0xe0] sm:$0xff]  ;;  %v83_v16 = vld [vmem:[%s1557_s1 + $0xd8] sm:$0xff]  ;;  %v82_v20 = vld [vmem:[%s1557_s1 + $0xd0] sm:$0xff] }
   0x6   :  { %855 = vmatprep.subr.mxu1 %v118_v5  ;;  %800 = vmatpush3.msra.mxu0 %v70_v6  ;;  %v116_v13 = vld [vmem:[%s1557_s1 + $0x1e0] sm:$0xff]  ;;  %v115_v17 = vld [vmem:[%s1557_s1 + $0x1d8] sm:$0xff]  ;;  %v114_v21 = vld [vmem:[%s1557_s1 + $0x1d0] sm:$0xff] }
   0x7   :  { %856 = vmatpush3.msra.mxu1 %v102_v7  ;;  %801 = vmatprep.subr.mxu0 %v85_v8  ;;  %v68_v14 = vld [vmem:[%s1557_s1 + $0x60] sm:$0xff]  ;;  %v67_v18 = vld [vmem:[%s1557_s1 + $0x58] sm:$0xff]  ;;  %v66_v22 = vld [vmem:[%s1557_s1 + $0x50] sm:$0xff] }
   0x8   :  { %857 = vmatprep.subr.mxu1 %v117_v9  ;;  %v100_v15 = vld [vmem:[%s1557_s1 + $0x160] sm:$0xff]  ;;  %802 = vmatpush3.msra.mxu0 %v69_v10  ;;  %v99_v19 = vld [vmem:[%s1557_s1 + $0x158] sm:$0xff]  ;;  %v98_v23 = vld [vmem:[%s1557_s1 + $0x150] sm:$0xff] }
   0x9   :  { %858 = vmatpush3.msra.mxu1 %v101_v11  ;;  %803 = vmatprep.subr.mxu0 %v84_v12  ;;  %v81_v24 = vld [vmem:[%s1557_s1 + $0xc8] sm:$0xff]  ;;  %v80_v28 = vld [vmem:[%s1557_s1 + $0xc0] sm:$0xff]  ;;  %v79_v32 = vld [vmem:[%s1557_s1 + $0xb8] sm:$0xff]  ;;  %v995_v12 = vmov 0  }
   0xa   :  { %859 = vmatprep.subr.mxu1 %v116_v13  ;;  %804 = vmatpush3.msra.mxu0 %v68_v14  ;;  %v113_v25 = vld [vmem:[%s1557_s1 + $0x1c8] sm:$0xff]  ;;  %v112_v29 = vld [vmem:[%s1557_s1 + $0x1c0] sm:$0xff]  ;;  %v111_v33 = vld [vmem:[%s1557_s1 + $0x1b8] sm:$0xff] }
   0xb   :  { %860 = vmatpush3.msra.mxu1 %v100_v15  ;;  %805 = vmatprep.subr.mxu0 %v83_v16  ;;  %v65_v26 = vld [vmem:[%s1557_s1 + $0x48] sm:$0xff]  ;;  %v64_v30 = vld [vmem:[%s1557_s1 + $0x40] sm:$0xff]  ;;  %v63_v34 = vld [vmem:[%s1557_s1 + $0x38] sm:$0xff] }
   0xc   :  { %861 = vmatprep.subr.mxu1 %v115_v17  ;;  %806 = vmatpush3.msra.mxu0 %v67_v18  ;;  %v97_v27 = vld [vmem:[%s1557_s1 + $0x148] sm:$0xff]  ;;  %v96_v31 = vld [vmem:[%s1557_s1 + $0x140] sm:$0xff]  ;;  %v95_v35 = vld [vmem:[%s1557_s1 + $0x138] sm:$0xff] }
   0xd   :  { %862 = vmatpush3.msra.mxu1 %v99_v19  ;;  %807 = vmatprep.subr.mxu0 %v82_v20  ;;  %v78_v36 = vld [vmem:[%s1557_s1 + $0xb0] sm:$0xff]  ;;  %v77_v40 = vld [vmem:[%s1557_s1 + $0xa8] sm:$0xff]  ;;  %v76_v44 = vld [vmem:[%s1557_s1 + $0xa0] sm:$0xff] }
   0xe   :  { %863 = vmatprep.subr.mxu1 %v114_v21  ;;  %808 = vmatpush3.msra.mxu0 %v66_v22  ;;  %v110_v37 = vld [vmem:[%s1557_s1 + $0x1b0] sm:$0xff]  ;;  %v109_v41 = vld [vmem:[%s1557_s1 + $0x1a8] sm:$0xff]  ;;  %v108_v45 = vld [vmem:[%s1557_s1 + $0x1a0] sm:$0xff] }
   0xf   :  { %864 = vmatpush3.msra.mxu1 %v98_v23  ;;  %809 = vmatprep.subr.mxu0 %v81_v24  ;;  %v62_v38 = vld [vmem:[%s1557_s1 + $0x30] sm:$0xff]  ;;  %v61_v42 = vld [vmem:[%s1557_s1 + $0x28] sm:$0xff]  ;;  %v60_v46 = vld [vmem:[%s1557_s1 + $0x20] sm:$0xff] }
  0x10   :  { %865 = vmatprep.subr.mxu1 %v113_v25  ;;  %810 = vmatpush3.msra.mxu0 %v65_v26  ;;  %v94_v39 = vld [vmem:[%s1557_s1 + $0x130] sm:$0xff]  ;;  %v93_v43 = vld [vmem:[%s1557_s1 + $0x128] sm:$0xff]  ;;  %v92_v47 = vld [vmem:[%s1557_s1 + $0x120] sm:$0xff] }
  0x11   :  { %866 = vmatpush3.msra.mxu1 %v97_v27  ;;  %811 = vmatprep.subr.mxu0 %v80_v28  ;;  %v75_v48 = vld [vmem:[%s1557_s1 + $0x98] sm:$0xff]  ;;  %v74_v52 = vld [vmem:[%s1557_s1 + $0x90] sm:$0xff]  ;;  %v73_v56 = vld [vmem:[%s1557_s1 + $0x88] sm:$0xff] }
  0x12   :  { %867 = vmatprep.subr.mxu1 %v112_v29  ;;  %812 = vmatpush3.msra.mxu0 %v64_v30  ;;  %v107_v49 = vld [vmem:[%s1557_s1 + $0x198] sm:$0xff]  ;;  %v106_v53 = vld [vmem:[%s1557_s1 + $0x190] sm:$0xff]  ;;  %v105_v57 = vld [vmem:[%s1557_s1 + $0x188] sm:$0xff] }
  0x13   :  { %868 = vmatpush3.msra.mxu1 %v96_v31  ;;  %813 = vmatprep.subr.mxu0 %v79_v32  ;;  %v59_v50 = vld [vmem:[%s1557_s1 + $0x18] sm:$0xff]  ;;  %v58_v54 = vld [vmem:[%s1557_s1 + $0x10] sm:$0xff]  ;;  %v57_v58 = vld [vmem:[%s1557_s1 + $0x8] sm:$0xff] }
  0x14   :  { %869 = vmatprep.subr.mxu1 %v111_v33  ;;  %814 = vmatpush3.msra.mxu0 %v63_v34  ;;  %v91_v51 = vld [vmem:[%s1557_s1 + $0x118] sm:$0xff]  ;;  %v90_v55 = vld [vmem:[%s1557_s1 + $0x110] sm:$0xff]  ;;  %v89_v59 = vld [vmem:[%s1557_s1 + $0x108] sm:$0xff] }
  0x15   :  { %870 = vmatpush3.msra.mxu1 %v95_v35  ;;  %815 = vmatprep.subr.mxu0 %v78_v36  ;;  %v72_v60 = vld [vmem:[%s1557_s1 + $0x80] sm:$0xff]  ;;  %v25_v63 = vld [vmem:[%s1556_s0 + $0x8] sm:$0xff]  ;;  %v27_v1 = vld [vmem:[%s1556_s0 + $0x18] sm:$0xff] }
  0x16   :  { %871 = vmatprep.subr.mxu1 %v110_v37  ;;  %816 = vmatpush3.msra.mxu0 %v62_v38  ;;  %v104_v61 = vld [vmem:[%s1557_s1 + $0x180] sm:$0xff]  ;;  %v26_v3 = vld [vmem:[%s1556_s0 + $0x10] sm:$0xff]  ;;  %v29_v4 = vld [vmem:[%s1556_s0 + $0x28] sm:$0xff] }
  0x17   :  { %872 = vmatpush3.msra.mxu1 %v94_v39  ;;  %817 = vmatprep.subr.mxu0 %v77_v40  ;;  %v56_v62 = vld [vmem:[%s1557_s1] sm:$0xff]  ;;  %v31_v5 = vld [vmem:[%s1556_s0 + $0x38] sm:$0xff]  ;;  %v460_v6 = vld [vmem:[%s1558_s2 + $0x8] sm:$0xff] }
  0x18   :  { %873 = vmatprep.subr.mxu1 %v109_v41  ;;  %818 = vmatpush3.msra.mxu0 %v61_v42  ;;  %v88_v0 = vld [vmem:[%s1557_s1 + $0x100] sm:$0xff]  ;;  %v30_v8 = vld [vmem:[%s1556_s0 + $0x30] sm:$0xff]  ;;  %v33_v10 = vld [vmem:[%s1556_s0 + $0x48] sm:$0xff] }
  0x19   :  { %874 = vmatpush3.msra.mxu1 %v93_v43  ;;  %819 = vmatprep.subr.mxu0 %v76_v44  ;;  %v24_v2 = vld [vmem:[%s1556_s0] sm:$0xff]  ;;  %v35_v11 = vld [vmem:[%s1556_s0 + $0x58] sm:$0xff] }
  0x1a   :  { %875 = vmatprep.subr.mxu1 %v108_v45  ;;  %820 = vmatpush3.msra.mxu0 %v60_v46  ;;  %v28_v7 = vld [vmem:[%s1556_s0 + $0x20] sm:$0xff] }
  0x1b   :  { %876 = vmatpush3.msra.mxu1 %v92_v47  ;;  %821 = vmatprep.subr.mxu0 %v75_v48  ;;  %v459_v9 = vld [vmem:[%s1558_s2] sm:$0xff] }
  0x1c   :  { %877 = vmatprep.subr.mxu1 %v107_v49  ;;  %822 = vmatpush3.msra.mxu0 %v59_v50 }
  0x1d   :  { %878 = vmatpush3.msra.mxu1 %v91_v51  ;;  %823 = vmatprep.subr.mxu0 %v74_v52 }
  0x1e   :  { %879 = vmatprep.subr.mxu1 %v106_v53  ;;  %824 = vmatpush3.msra.mxu0 %v58_v54 }
  0x1f   :  { %880 = vmatpush3.msra.mxu1 %v90_v55  ;;  %825 = vmatprep.subr.mxu0 %v73_v56 }
  0x20   :  { %881 = vmatprep.subr.mxu1 %v105_v57  ;;  %826 = vmatpush3.msra.mxu0 %v57_v58 }
  0x21   :  { %882 = vmatpush3.msra.mxu1 %v89_v59  ;;  %827 = vmatprep.subr.mxu0 %v72_v60 }
  0x22   :  { %883 = vmatprep.subr.mxu1 %v104_v61  ;;  %828 = vmatpush3.msra.mxu0 %v56_v62 }
  0x23   :  { %184 = vmatprep.mubr.f32.mxu0 %v25_v63  ;;  %884 = vmatpush3.msra.mxu1 %v88_v0 }
  0x24   :  { %289 = vmatprep.mubr.f32.mxu1 %v27_v1  ;;  %185 = vmatmul.mubr.f32.vlgmr.msra.gmra.mxu0 %v24_v2 }
  0x25   :  { %290 = vmatmul.mubr.f32.vlgmr.msra.gmra.mxu1 %v26_v3  ;;  %189 = vmatprep.mubr.f32.mxu0 %v29_v4 }
  0x26   :  { %294 = vmatprep.mubr.f32.mxu1 %v31_v5  ;;  %952 = vset.pattern.permute.xlu1 %v995_v12 }
  0x27   :  { %951 = vset.pattern.permute.xlu0 %v995_v12 }
  0x28   :  { %11 = vsyncpa [#allocation3], 0  ;;  %474 = vperm.xlu1 %952, %v460_v6   ;;  %469 = vperm.xlu0 %951, %v459_v9   ;;  %v515_v13 = vld [vmem:[%s1559_s3] sm:$0xff]  ;;  %v464_v14 = vld [vmem:[%s1558_s2 + $0x28] sm:$0xff]  ;;  %vm330_vm0 = vcmask 261120   ;;  %vm744_vm9 = vcmask 15360  }
  0x29   :  { %190 = vmatmul.mubr.f32.gmra.mxu0 %v28_v7  ;;  %295 = vmatmul.mubr.f32.gmra.mxu1 %v30_v8  ;;  %v32_v15 = vld [vmem:[%s1556_s0 + $0x40] sm:$0xff]  ;;  %v34_v16 = vld [vmem:[%s1556_s0 + $0x50] sm:$0xff]  ;;  %v37_v17 = vld [vmem:[%s1556_s0 + $0x68] sm:$0xff]  ;;  %vm772_vm10 = vcmask 8192  }
  0x2a   :  { %194 = vmatprep.mubr.f32.mxu0 %v33_v10  ;;  %299 = vmatprep.mubr.f32.mxu1 %v35_v11  ;;  %v39_v18 = vld [vmem:[%s1556_s0 + $0x78] sm:$0xff]  ;;  %v516_v19 = vld [vmem:[%s1559_s3 + $0x8] sm:$0xff]  ;;  %v36_v21 = vld [vmem:[%s1556_s0 + $0x60] sm:$0xff] }
  0x2b   :  { %v520_v20 = vld [vmem:[%s1559_s3 + $0x28] sm:$0xff]  ;;  %v38_v22 = vld [vmem:[%s1556_s0 + $0x70] sm:$0xff]  ;;  %v43_v24 = vld [vmem:[%s1556_s0 + $0x98] sm:$0xff] }
  0x2c   :  { %525 = vperm.xlu1 %952, %v515_v13   ;;  %494 = vperm.xlu0 %951, %v464_v14   ;;  %v41_v23 = vld [vmem:[%s1556_s0 + $0x88] sm:$0xff]  ;;  %v461_v25 = vld [vmem:[%s1558_s2 + $0x10] sm:$0xff]  ;;  %v40_v26 = vld [vmem:[%s1556_s0 + $0x80] sm:$0xff] }
  0x2d   :  { %195 = vmatmul.mubr.f32.gmra.mxu0 %v32_v15  ;;  %300 = vmatmul.mubr.f32.gmra.mxu1 %v34_v16  ;;  %v42_v27 = vld [vmem:[%s1556_s0 + $0x90] sm:$0xff]  ;;  %v45_v28 = vld [vmem:[%s1556_s0 + $0xa8] sm:$0xff]  ;;  %v47_v29 = vld [vmem:[%s1556_s0 + $0xb8] sm:$0xff] }
  0x2e   :  { %199 = vmatprep.mubr.f32.mxu0 %v37_v17  ;;  %304 = vmatprep.mubr.f32.mxu1 %v39_v18  ;;  %v462_v30 = vld [vmem:[%s1558_s2 + $0x18] sm:$0xff]  ;;  %v44_v31 = vld [vmem:[%s1556_s0 + $0xa0] sm:$0xff]  ;;  %v46_v32 = vld [vmem:[%s1556_s0 + $0xb0] sm:$0xff] }
  0x2f   :  { %v49_v33 = vld [vmem:[%s1556_s0 + $0xc8] sm:$0xff]  ;;  %v51_v34 = vld [vmem:[%s1556_s0 + $0xd8] sm:$0xff]  ;;  %v517_v35 = vld [vmem:[%s1559_s3 + $0x10] sm:$0xff] }
  0x30   :  { %530 = vperm.xlu1 %952, %v516_v19   ;;  %550 = vperm.xlu0 %951, %v520_v20   ;;  %v48_v36 = vld [vmem:[%s1556_s0 + $0xc0] sm:$0xff]  ;;  %v50_v37 = vld [vmem:[%s1556_s0 + $0xd0] sm:$0xff]  ;;  %v53_v38 = vld [vmem:[%s1556_s0 + $0xe8] sm:$0xff] }
  0x31   :  { %200 = vmatmul.mubr.f32.gmra.mxu0 %v36_v21  ;;  %305 = vmatmul.mubr.f32.gmra.mxu1 %v38_v22  ;;  %v55_v39 = vld [vmem:[%s1556_s0 + $0xf8] sm:$0xff]  ;;  %v52_v41 = vld [vmem:[%s1556_s0 + $0xe0] sm:$0xff]  ;;  %v54_v42 = vld [vmem:[%s1556_s0 + $0xf0] sm:$0xff] }
  0x32   :  { %204 = vmatprep.mubr.f32.mxu0 %v41_v23  ;;  %309 = vmatprep.mubr.f32.mxu1 %v43_v24  ;;  %v518_v40 = vld [vmem:[%s1559_s3 + $0x18] sm:$0xff]  ;;  %v463_v43 = vld [vmem:[%s1558_s2 + $0x20] sm:$0xff]  ;;  %v465_v45 = vld [vmem:[%s1558_s2 + $0x30] sm:$0xff] }
  0x33   :  { %v519_v44 = vld [vmem:[%s1559_s3 + $0x20] sm:$0xff] }
  0x34   :  { %479 = vperm.xlu1 %952, %v461_v25  }
  0x35   :  { %205 = vmatmul.mubr.f32.gmra.mxu0 %v40_v26  ;;  %310 = vmatmul.mubr.f32.gmra.mxu1 %v42_v27 }
  0x36   :  { %209 = vmatprep.mubr.f32.mxu0 %v45_v28  ;;  %314 = vmatprep.mubr.f32.mxu1 %v47_v29 }
  0x38   :  { %484 = vperm.xlu1 %952, %v462_v30  }
  0x39   :  { %210 = vmatmul.mubr.f32.gmra.mxu0 %v44_v31  ;;  %315 = vmatmul.mubr.f32.gmra.mxu1 %v46_v32 }
  0x3a   :  { %214 = vmatprep.mubr.f32.mxu0 %v49_v33  ;;  %319 = vmatprep.mubr.f32.mxu1 %v51_v34 }
  0x3c   :  { %535 = vperm.xlu1 %952, %v517_v35  }
  0x3d   :  { %215 = vmatmul.mubr.f32.gmra.mxu0 %v48_v36  ;;  %320 = vmatmul.mubr.f32.gmra.mxu1 %v50_v37 }
  0x3e   :  { %219 = vmatprep.mubr.f32.mxu0 %v53_v38  ;;  %324 = vmatprep.mubr.f32.mxu1 %v55_v39 }
  0x40   :  { %540 = vperm.xlu1 %952, %v518_v40  }
  0x41   :  { %220 = vmatmul.mubr.f32.gmra.mxu0 %v52_v41  ;;  %325 = vmatmul.mubr.f32.gmra.mxu1 %v54_v42 }
  0x44   :  { %489 = vperm.xlu1 %952, %v463_v43  }
  0x48   :  { %545 = vperm.xlu1 %952, %v519_v44  }
  0x4c   :  { %499 = vperm.xlu1 %952, %v465_v45  }
  0xe4   :  { %v829_v46 = vpop.f32.mrf.mxu0 }
  0xe5   :  { %v885_v47 = vpop.f32.mrf.mxu1 }
  0xe6   :  { %v830_v48 = vpop.f32.mrf.mxu0 }
  0xe7   :  { %v886_v49 = vpop.f32.mrf.mxu1  ;;  %v831_v50 = vadd.f32 %v830_v48, %v829_v46 }
  0xe8   :  { %v887_v51 = vadd.f32 %v886_v49, %v885_v47 }
  0xe9   :  { %v832_v52 = vpop.f32.mrf.mxu0  ;;  %v888_v53 = vpop.f32.mrf.mxu1 }
  0xea   :  { %v1359_v54 = vadd.f32 %v887_v51, %v831_v50 }
  0xeb   :  { %v833_v55 = vpop.f32.mrf.mxu0  ;;  %v889_v56 = vpop.f32.mrf.mxu1 }
  0xec   :  { %v834_v57 = vadd.f32 %v833_v55, %v832_v52  ;;  %v890_v58 = vadd.f32 %v889_v56, %v888_v53  ;;  %v331_v59 = vsel %vm330_vm0, %v1359_v54, 0.0  ;;  %v355_v60 = vmul.f32 %v1359_v54, %v1359_v54 }
  0xed   :  { %v835_v61 = vpop.f32.mrf.mxu0  ;;  %v891_v62 = vpop.f32.mrf.mxu1  ;;  %332 = vadd.xlane.f32.xlu0 %v331_v59 }
  0xee   :  { %v1365_v63 = vadd.f32 %v890_v58, %v834_v57  ;;  %v363_v0 = vsel %vm330_vm0, %v355_v60, 0.0 }
  0xef   :  { %v836_v1 = vpop.f32.mrf.mxu0  ;;  %v892_v2 = vpop.f32.mrf.mxu1  ;;  %364 = vadd.xlane.f32.xlu1 %v363_v0  ;;  %v614_v0 = vld [vmem:[%s1561_s5 + $0x18] sm:$0xff] }
  0xf0   :  { %v837_v3 = vadd.f32 %v836_v1, %v835_v61  ;;  %v893_v4 = vadd.f32 %v892_v2, %v891_v62  ;;  %v334_v5 = vsel %vm330_vm0, %v1365_v63, 0.0  ;;  %v356_v6 = vmul.f32 %v1365_v63, %v1365_v63  ;;  %921 = vmatprep.subr.mxu0 %v614_v0  ;;  %941 = vmatprep.subr.mxu1 %v614_v0  ;;  %v613_v1 = vld [vmem:[%s1561_s5 + $0x10] sm:$0xff]  ;;  %v612_v2 = vld [vmem:[%s1561_s5 + $0x8] sm:$0xff] }
  0xf1   :  { %v838_v7 = vpop.f32.mrf.mxu0  ;;  %v894_v8 = vpop.f32.mrf.mxu1  ;;  %335 = vadd.xlane.f32.xlu0 %v334_v5  ;;  %922 = vmatpush3.msra.mxu0 %v614_v0  ;;  %v611_v5 = vld [vmem:[%s1561_s5] sm:$0xff] }
  0xf2   :  { %v1372_v9 = vadd.f32 %v893_v4, %v837_v3  ;;  %v366_v10 = vsel %vm330_vm0, %v356_v6, 0.0  ;;  %945 = vmatpush3.msra.mxu1 %v614_v0  ;;  %923 = vmatprep.subr.mxu0 %v613_v1  ;;  %v521_v3 = vld [vmem:[%s1559_s3 + $0x30] sm:$0xff]  ;;  %v466_v4 = vld [vmem:[%s1558_s2 + $0x38] sm:$0xff] }
  0xf3   :  { %v839_v11 = vpop.f32.mrf.mxu0  ;;  %v895_v12 = vpop.f32.mrf.mxu1  ;;  %367 = vadd.xlane.f32.xlu1 %v366_v10  ;;  %942 = vmatprep.subr.mxu1 %v613_v1  ;;  %v522_v6 = vld [vmem:[%s1559_s3 + $0x38] sm:$0xff] }
  0xf4   :  { %v840_v13 = vadd.f32 %v839_v11, %v838_v7  ;;  %v896_v14 = vadd.f32 %v895_v12, %v894_v8  ;;  %v337_v15 = vsel %vm330_vm0, %v1372_v9, 0.0  ;;  %v357_v16 = vmul.f32 %v1372_v9, %v1372_v9  ;;  %924 = vmatpush3.msra.mxu0 %v613_v1  ;;  %946 = vmatpush3.msra.mxu1 %v613_v1  ;;  %v1436_v7 = vpop.permute.xlu1 %474 }
  0xf5   :  { %v841_v17 = vpop.f32.mrf.mxu0  ;;  %v897_v18 = vpop.f32.mrf.mxu1  ;;  %338 = vadd.xlane.f32.xlu0 %v337_v15  ;;  %925 = vmatprep.subr.mxu0 %v612_v2 }
  0xf6   :  { %v1379_v19 = vadd.f32 %v896_v14, %v840_v13  ;;  %v369_v22 = vsel %vm330_vm0, %v357_v16, 0.0  ;;  %943 = vmatprep.subr.mxu1 %v612_v2  ;;  %926 = vmatpush3.msra.mxu0 %v612_v2  ;;  %v1450_v15 = vpop.permute.xlu0 %469 }
  0xf7   :  { %v842_v20 = vpop.f32.mrf.mxu0  ;;  %v898_v21 = vpop.f32.mrf.mxu1  ;;  %947 = vmatpush3.msra.mxu1 %v612_v2  ;;  %927 = vmatprep.subr.mxu0 %v611_v5 }
  0xf8   :  { %v843_v23 = vadd.f32 %v842_v20, %v841_v17  ;;  %v899_v24 = vadd.f32 %v898_v21, %v897_v18  ;;  %v340_v25 = vsel %vm330_vm0, %v1379_v19, 0.0  ;;  %v358_v26 = vmul.f32 %v1379_v19, %v1379_v19  ;;  %944 = vmatprep.subr.mxu1 %v611_v5  ;;  %928 = vmatpush3.msra.mxu0 %v611_v5  ;;  %v1438_v8 = vpop.permute.xlu1 %525 }
  0xf9   :  { %v844_v27 = vpop.f32.mrf.mxu0  ;;  %v900_v28 = vpop.f32.mrf.mxu1  ;;  %341 = vadd.xlane.f32.xlu1 %v340_v25  ;;  %370 = vadd.xlane.f32.xlu0 %v369_v22 }
  0xfa   :  { %v1386_v29 = vadd.f32 %v899_v24, %v843_v23  ;;  %v372_v32 = vsel %vm330_vm0, %v358_v26, 0.0  ;;  %948 = vmatpush3.msra.mxu1 %v611_v5  ;;  %v1454_v17 = vpop.permute.xlu0 %494 }
  0xfb   :  { %v845_v30 = vpop.f32.mrf.mxu0  ;;  %v901_v31 = vpop.f32.mrf.mxu1 }
  0xfc   :  { %v846_v33 = vadd.f32 %v845_v30, %v844_v27  ;;  %v902_v34 = vadd.f32 %v901_v31, %v900_v28  ;;  %v343_v35 = vsel %vm330_vm0, %v1386_v29, 0.0  ;;  %v359_v36 = vmul.f32 %v1386_v29, %v1386_v29  ;;  %v1440_v10 = vpop.permute.xlu1 %530 }
  0xfd   :  { %v847_v37 = vpop.f32.mrf.mxu0  ;;  %v903_v38 = vpop.f32.mrf.mxu1  ;;  %373 = vadd.xlane.f32.xlu1 %v372_v32  ;;  %344 = vadd.xlane.f32.xlu0 %v343_v35 }
  0xfe   :  { %v1393_v39 = vadd.f32 %v902_v34, %v846_v33  ;;  %v375_v42 = vsel %vm330_vm0, %v359_v36, 0.0  ;;  %v1458_v20 = vpop.permute.xlu0 %550 }
  0xff   :  { %v848_v40 = vpop.f32.mrf.mxu0  ;;  %v904_v41 = vpop.f32.mrf.mxu1 }
 0x100   :  { %v849_v43 = vadd.f32 %v848_v40, %v847_v37  ;;  %v905_v44 = vadd.f32 %v904_v41, %v903_v38  ;;  %v346_v45 = vsel %vm330_vm0, %v1393_v39, 0.0  ;;  %v360_v46 = vmul.f32 %v1393_v39, %v1393_v39  ;;  %v1442_v11 = vpop.permute.xlu1 %479 }
 0x101   :  { %v850_v47 = vpop.f32.mrf.mxu0  ;;  %v906_v48 = vpop.f32.mrf.mxu1  ;;  %347 = vadd.xlane.f32.xlu1 %v346_v45  ;;  %376 = vadd.xlane.f32.xlu0 %v375_v42 }
 0x102   :  { %v1400_v49 = vadd.f32 %v905_v44, %v849_v43  ;;  %v378_v52 = vsel %vm330_vm0, %v360_v46, 0.0 }
 0x103   :  { %v851_v50 = vpop.f32.mrf.mxu0  ;;  %v907_v51 = vpop.f32.mrf.mxu1 }
 0x104   :  { %v852_v53 = vadd.f32 %v851_v50, %v850_v47  ;;  %v908_v55 = vadd.f32 %v907_v51, %v906_v48  ;;  %v349_v56 = vsel %vm330_vm0, %v1400_v49, 0.0  ;;  %v361_v57 = vmul.f32 %v1400_v49, %v1400_v49  ;;  %v1444_v12 = vpop.permute.xlu1 %484 }
 0x105   :  { %379 = vadd.xlane.f32.xlu1 %v378_v52  ;;  %350 = vadd.xlane.f32.xlu0 %v349_v56 }
 0x106   :  { %v1407_v58 = vadd.f32 %v908_v55, %v852_v53  ;;  %v381_v60 = vsel %vm330_vm0, %v361_v57, 0.0 }
 0x108   :  { %v352_v59 = vsel %vm330_vm0, %v1407_v58, 0.0  ;;  %v362_v61 = vmul.f32 %v1407_v58, %v1407_v58  ;;  %v1446_v13 = vpop.permute.xlu1 %535 }
 0x109   :  { %353 = vadd.xlane.f32.xlu1 %v352_v59  ;;  %382 = vadd.xlane.f32.xlu0 %v381_v60 }
 0x10a   :  { %v384_v62 = vsel %vm330_vm0, %v362_v61, 0.0 }
 0x10c   :  { %v1448_v14 = vpop.permute.xlu1 %540 }
 0x10d   :  { %385 = vadd.xlane.f32.xlu1 %v384_v62 }
 0x110   :  { %v1452_v16 = vpop.permute.xlu1 %489 }
 0x114   :  { %v1456_v18 = vpop.permute.xlu1 %545 }
 0x118   :  { %v1460_v21 = vpop.permute.xlu1 %499 }
 0x11e   :  { %555 = vperm.xlu1 %952, %v521_v3  }
 0x11f   :  { %504 = vperm.xlu0 %951, %v466_v4  }
 0x123   :  { %560 = vperm.xlu0 %951, %v522_v6  }
 0x176   :  { %v333_v22 = vpop.xlane.xlu0 %332 }
 0x177   :  { %v387_v23 = vmul.f32 0.03125, %v333_v22 }
 0x178   :  { %v365_v24 = vpop.xlane.xlu1 %364 }
 0x179   :  { %v403_v25 = vmul.f32 %v387_v23, %v387_v23  ;;  %v395_v26 = vmul.f32 0.03125, %v365_v24  ;;  %v427_v5 = vsub.f32 %v1359_v54, %v387_v23 }
 0x17a   :  { %v336_v27 = vpop.xlane.xlu0 %335 }
 0x17b   :  { %v411_v28 = vsub.f32 %v395_v26, %v403_v25  ;;  %v388_v30 = vmul.f32 0.03125, %v336_v27 }
 0x17c   :  { %v368_v31 = vpop.xlane.xlu1 %367 }
 0x17d   :  { %v419_v32 = vmax.f32 %v411_v28, 0.0  ;;  %v404_v33 = vmul.f32 %v388_v30, %v388_v30  ;;  %v396_v34 = vmul.f32 0.03125, %v368_v31  ;;  %v428_v31 = vsub.f32 %v1365_v63, %v388_v30 }
 0x17e   :  { %v339_v35 = vpop.xlane.xlu0 %338 }
 0x17f   :  { %v435_v36 = vadd.f32 1e-05, %v419_v32  ;;  %v412_v37 = vsub.f32 %v396_v34, %v404_v33  ;;  %v1462_v38 = vmul.f32 0.03125, %v339_v35 }
 0x181   :  { %953 = vrsqrt.f32 %v435_v36  ;;  %v420_v40 = vmax.f32 %v412_v37, 0.0  ;;  %v405_v44 = vmul.f32 %v1462_v38, %v1462_v38 }
 0x182   :  { %v342_v41 = vpop.xlane.xlu1 %341  ;;  %v371_v42 = vpop.xlane.xlu0 %370 }
 0x183   :  { %v436_v43 = vadd.f32 1e-05, %v420_v40  ;;  %v1466_v45 = vmul.f32 0.03125, %v342_v41  ;;  %v397_v46 = vmul.f32 0.03125, %v371_v42 }
 0x185   :  { %955 = vrsqrt.f32 %v436_v43  ;;  %v413_v47 = vsub.f32 %v397_v46, %v405_v44  ;;  %v406_v51 = vmul.f32 %v1466_v45, %v1466_v45 }
 0x186   :  { %v374_v48 = vpop.xlane.xlu1 %373  ;;  %v345_v50 = vpop.xlane.xlu0 %344 }
 0x187   :  { %v421_v52 = vmax.f32 %v413_v47, 0.0  ;;  %v398_v53 = vmul.f32 0.03125, %v374_v48  ;;  %v1470_v55 = vmul.f32 0.03125, %v345_v50 }
 0x189   :  { %v437_v56 = vadd.f32 1e-05, %v421_v52  ;;  %v414_v57 = vsub.f32 %v398_v53, %v406_v51  ;;  %v407_v59 = vmul.f32 %v1470_v55, %v1470_v55 }
 0x18a   :  { %v348_v60 = vpop.xlane.xlu1 %347  ;;  %v377_v61 = vpop.xlane.xlu0 %376 }
 0x18b   :  { %957 = vrsqrt.f32 %v437_v56  ;;  %v422_v62 = vmax.f32 %v414_v57, 0.0  ;;  %v1474_v0 = vmul.f32 0.03125, %v348_v60  ;;  %v399_v1 = vmul.f32 0.03125, %v377_v61  ;;  %v596_v60 = vld [vmem:[%s1560_s4 + $0x8] sm:$0xff] }
 0x18d   :  { %v438_v2 = vadd.f32 1e-05, %v422_v62  ;;  %v415_v3 = vsub.f32 %v399_v1, %v407_v59  ;;  %v408_v24 = vmul.f32 %v1474_v0, %v1474_v0  ;;  %v430_v62 = vsub.f32 %v1379_v19, %v1466_v45 }
 0x18e   :  { %v954_v4 = vpop.eup %953  ;;  %v380_v6 = vpop.xlane.xlu1 %379 }
 0x18f   :  { %v351_v22 = vpop.xlane.xlu0 %350  ;;  %959 = vrsqrt.f32 %v438_v2  ;;  %v423_v25 = vmax.f32 %v415_v3, 0.0  ;;  %v400_v26 = vmul.f32 0.03125, %v380_v6  ;;  %v451_v28 = vmul.f32 %v954_v4, %v427_v5 }
 0x190   :  { %v1479_v27 = vmul.f32 0.03125, %v351_v22  ;;  %v431_v22 = vsub.f32 %v1386_v29, %v1470_v55 }
 0x191   :  { %v439_v32 = vadd.f32 1e-05, %v423_v25  ;;  %v416_v33 = vsub.f32 %v400_v26, %v408_v24  ;;  %v507_v54 = vmul.f32 %v1450_v15, %v451_v28  ;;  %v595_v15 = vld [vmem:[%s1560_s4] sm:$0xff]  ;;  %v597_v25 = vld [vmem:[%s1560_s4 + $0x10] sm:$0xff]  ;;  %v432_v28 = vsub.f32 %v1393_v39, %v1474_v0 }
 0x192   :  { %v956_v34 = vpop.eup %955  ;;  %v354_v35 = vpop.xlane.xlu1 %353  ;;  %v409_v41 = vmul.f32 %v1479_v27, %v1479_v27 }
 0x193   :  { %v383_v36 = vpop.xlane.xlu0 %382  ;;  %v452_v23 = vmul.f32 %v956_v34, %v428_v31  ;;  %961 = vrsqrt.f32 %v439_v32  ;;  %v424_v37 = vmax.f32 %v416_v33, 0.0  ;;  %v1483_v40 = vmul.f32 0.03125, %v354_v35 }
 0x194   :  { %v401_v42 = vmul.f32 0.03125, %v383_v36  ;;  %v563_v43 = vadd.f32 %v1438_v8, %v507_v54  ;;  %v599_v36 = vld [vmem:[%s1560_s4 + $0x20] sm:$0xff]  ;;  %v433_v54 = vsub.f32 %v1400_v49, %v1479_v27 }
 0x195   :  { %v508_v63 = vmul.f32 %v1436_v7, %v452_v23  ;;  %v440_v30 = vadd.f32 1e-05, %v424_v37  ;;  %v410_v50 = vmul.f32 %v1483_v40, %v1483_v40  ;;  %v429_v7 = vsub.f32 %v1372_v9, %v1462_v38 }
 0x196   :  { %v417_v44 = vsub.f32 %v401_v42, %v409_v41  ;;  %v386_v46 = vpop.xlane.xlu1 %385  ;;  %vm571_vm1 = vcmp.gt.f32.partialorder %v563_v43, 0.0  ;;  %v579_v47 = vmul.f32 0.2, %v563_v43 }
 0x197   :  { %v564_v48 = vadd.f32 %v1440_v10, %v508_v63  ;;  %963 = vrsqrt.f32 %v440_v30  ;;  %v402_v51 = vmul.f32 0.03125, %v386_v46  ;;  %v600_v63 = vld [vmem:[%s1560_s4 + $0x28] sm:$0xff] }
 0x198   :  { %v958_v52 = vpop.eup %957  ;;  %v425_v8 = vmax.f32 %v417_v44, 0.0  ;;  %v587_v53 = vsel %vm571_vm1, %v563_v43, %v579_v47 }
 0x199   :  { %v418_v56 = vsub.f32 %v402_v51, %v410_v50  ;;  %v603_v57 = vmul.f32 %v595_v15, %v587_v53  ;;  %vm572_vm2 = vcmp.gt.f32.partialorder %v564_v48, 0.0  ;;  %v580_v59 = vmul.f32 0.2, %v564_v48 }
 0x19a   :  { %v441_v10 = vadd.f32 1e-05, %v425_v8  ;;  %v453_v61 = vmul.f32 %v958_v52, %v429_v7  ;;  %v556_v27 = vpop.permute.xlu1 %555  ;;  %v602_v52 = vld [vmem:[%s1560_s4 + $0x38] sm:$0xff] }
 0x19b   :  { %v426_v1 = vmax.f32 %v418_v56, 0.0  ;;  %929 = vmatprep.mubr.msk.f32.mxu0 %vm330_vm0, %v603_v57  ;;  %v588_v2 = vsel %vm572_vm2, %v564_v48, %v580_v59 }
 0x19c   :  { %v960_v9 = vpop.eup %959  ;;  %965 = vrsqrt.f32 %v441_v10  ;;  %v604_v38 = vmul.f32 %v596_v60, %v588_v2  ;;  %v509_v3 = vmul.f32 %v1442_v11, %v453_v61 }
 0x19d   :  { %v442_v4 = vadd.f32 1e-05, %v426_v1  ;;  %v454_v5 = vmul.f32 %v960_v9, %v430_v62 }
 0x19e   :  { %930 = vmatmul.mubr.msk.f32.vlgmr.msra.gmra.mxu0 %vm330_vm0, %v604_v38  ;;  %v565_v6 = vadd.f32 %v1446_v13, %v509_v3 }
 0x19f   :  { %967 = vrsqrt.f32 %v442_v4  ;;  %v510_v19 = vmul.f32 %v1444_v12, %v454_v5  ;;  %v598_v12 = vld [vmem:[%s1560_s4 + $0x18] sm:$0xff] }
 0x1a0   :  { %v962_v45 = vpop.eup %961  ;;  %vm573_vm3 = vcmp.gt.f32.partialorder %v565_v6, 0.0  ;;  %v581_v24 = vmul.f32 0.2, %v565_v6 }
 0x1a1   :  { %v566_v11 = vadd.f32 %v1448_v14, %v510_v19  ;;  %v455_v26 = vmul.f32 %v962_v45, %v431_v22 }
 0x1a2   :  { %v589_v13 = vsel %vm573_vm3, %v565_v6, %v581_v24 }
 0x1a3   :  { %v605_v31 = vmul.f32 %v597_v25, %v589_v13  ;;  %vm574_vm4 = vcmp.gt.f32.partialorder %v566_v11, 0.0  ;;  %v582_v29 = vmul.f32 0.2, %v566_v11  ;;  %v511_v55 = vmul.f32 %v1452_v16, %v455_v26 }
 0x1a4   :  { %v964_v32 = vpop.eup %963 }
 0x1a5   :  { %v456_v33 = vmul.f32 %v964_v32, %v432_v28  ;;  %932 = vmatprep.mubr.msk.f32.mxu0 %vm330_vm0, %v605_v31  ;;  %v590_v34 = vsel %vm574_vm4, %v566_v11, %v582_v29  ;;  %v567_v14 = vadd.f32 %v1456_v18, %v511_v55  ;;  %v505_v18 = vpop.permute.xlu0 %504 }
 0x1a6   :  { %v606_v35 = vmul.f32 %v598_v12, %v590_v34 }
 0x1a7   :  { %v512_v39 = vmul.f32 %v1454_v17, %v456_v33  ;;  %vm575_vm5 = vcmp.gt.f32.partialorder %v567_v14, 0.0  ;;  %v583_v0 = vmul.f32 0.2, %v567_v14  ;;  %v434_v17 = vsub.f32 %v1407_v58, %v1483_v40  ;;  %v601_v58 = vld [vmem:[%s1560_s4 + $0x30] sm:$0xff]  ;;  %s996_s4 = smov [#allocation2]  }
 0x1a8   :  { %933 = vmatmul.mubr.msk.f32.gmra.mxu0 %vm330_vm0, %v606_v35  ;;  %s780_s19 = sshll.u32 %s996_s4, 4  ;;  %s781_s19 = int_to_ptr.vmem [resolvable:$true] %s780_s19 }
 0x1a9   :  { %v966_v16 = vpop.eup %965  ;;  %v568_v23 = vadd.f32 %v1458_v20, %v512_v39  ;;  %v591_v37 = vsel %vm575_vm5, %v567_v14, %v583_v0  ;;  %v561_v48 = vpop.permute.xlu0 %560  ;;  %s973_s20 = scalar_lea.vmem %s781_s19, 16  ;;  %s977_s21 = scalar_lea.vmem %s781_s19, 32 }
 0x1aa   :  { %v457_v41 = vmul.f32 %v966_v16, %v433_v54  ;;  %v607_v42 = vmul.f32 %v599_v36, %v591_v37  ;;  %p974_p0 = scmp.ne.s32.totalorder %s781_s19, %s973_s20  ;;  %p978_p1 = scmp.lt.s32.totalorder %s781_s19, %s781_s19 }
 0x1ab   :  { %vm576_vm6 = vcmp.gt.f32.partialorder %v568_v23, 0.0  ;;  %v584_v43 = vmul.f32 0.2, %v568_v23  ;;  %p979_p2 = scmp.lt.s32.totalorder %s977_s21, %s973_s20 }
 0x1ac   :  { %v968_v30 = vpop.eup %967  ;;  %v513_v49 = vmul.f32 %v1460_v21, %v457_v41  ;;  %935 = vmatprep.mubr.msk.f32.mxu1 %vm330_vm0, %v607_v42 }
 0x1ad   :  { %v458_v20 = vmul.f32 %v968_v30, %v434_v17  ;;  %v592_v44 = vsel %vm576_vm6, %v568_v23, %v584_v43  ;;  %p980_p3 = por %p979_p2, %p978_p1 }
 0x1ae   :  { %v569_v46 = vadd.f32 %v556_v27, %v513_v49  ;;  %v608_v47 = vmul.f32 %v600_v63, %v592_v44 }
 0x1af   :  { %v514_v15 = vmul.f32 %v505_v18, %v458_v20  ;;  %p981_p4 = pnand %p980_p3, %p974_p0 }
 0x1b0   :  { %vm577_vm7 = vcmp.gt.f32.partialorder %v569_v46, 0.0  ;;  %v585_v40 = vmul.f32 0.2, %v569_v46  ;;  %936 = vmatmul.mubr.msk.f32.vlgmr.msra.gmra.mxu1 %vm330_vm0, %v608_v47 }
 0x1b1   :  { %v570_v50 = vadd.f32 %v561_v48, %v514_v15 }
 0x1b2   :  { %v593_v51 = vsel %vm577_vm7, %v569_v46, %v585_v40 }
 0x1b3   :  { %v609_v21 = vmul.f32 %v601_v58, %v593_v51  ;;  %vm578_vm8 = vcmp.gt.f32.partialorder %v570_v50, 0.0  ;;  %v586_v7 = vmul.f32 0.2, %v570_v50 }
 0x1b5   :  { %v594_v8 = vsel %vm578_vm8, %v570_v50, %v586_v7  ;;  %938 = vmatprep.mubr.msk.f32.mxu1 %vm330_vm0, %v609_v21 }
 0x1b6   :  { %v610_v53 = vmul.f32 %v602_v52, %v594_v8 }
 0x1b8   :  { %939 = vmatmul.mubr.msk.f32.gmra.mxu1 %vm330_vm0, %v610_v53 }
 0x25e   :  { %v931_v56 = vpop.f32.mrf.mxu0 }
 0x25f   :  { %v746_v61 = vsel %vm744_vm9, %v931_v56, 0.0 }
 0x260   :  { %v705_v57 = vpop.f32.mrf.mxu0 }
 0x261   :  { %v745_v10 = vsel %vm744_vm9, %v705_v57, 0.0 }
 0x262   :  { %v747_v1 = vadd.f32 %v746_v61, %v745_v10 }
 0x268   :  { %v934_v59 = vpop.f32.mrf.mxu0 }
 0x269   :  { %v750_v3 = vsel %vm744_vm9, %v934_v59, 0.0 }
 0x26a   :  { %v715_v60 = vpop.f32.mrf.mxu0 }
 0x26b   :  { %v748_v62 = vsel %vm744_vm9, %v715_v60, 0.0 }
 0x26c   :  { %v749_v2 = vadd.f32 %v748_v62, %v747_v1 }
 0x26e   :  { %v751_v5 = vadd.f32 %v750_v3, %v749_v2 }
 0x270   :  { %v937_v9 = vpop.f32.mrf.mxu1 }
 0x271   :  { %v754_v19 = vsel %vm744_vm9, %v937_v9, 0.0 }
 0x272   :  { %v725_v38 = vpop.f32.mrf.mxu1 }
 0x273   :  { %v752_v4 = vsel %vm744_vm9, %v725_v38, 0.0 }
 0x274   :  { %v753_v6 = vadd.f32 %v752_v4, %v751_v5 }
 0x276   :  { %v755_v24 = vadd.f32 %v754_v19, %v753_v6 }
 0x278   :  { %v940_v22 = vpop.f32.mrf.mxu1 }
 0x279   :  { %v758_v26 = vsel %vm744_vm9, %v940_v22, 0.0 }
 0x27a   :  { %v735_v45 = vpop.f32.mrf.mxu1 }
 0x27b   :  { %v756_v25 = vsel %vm744_vm9, %v735_v45, 0.0 }
 0x27c   :  { %v757_v11 = vadd.f32 %v756_v25, %v755_v24 }
 0x27e   :  { %v759_v28 = vadd.f32 %v758_v26, %v757_v11 }
 0x280   :  { %v760_v13 = vrot.slane %v759_v28, 4 }
 0x282   :  { %v761_v31 = vadd.f32 %v760_v13, %v759_v28 }
 0x284   :  { %v762_v29 = vrot.slane %v761_v31, 2 }
 0x286   :  { %v763_v12 = vadd.f32 %v762_v29, %v761_v31 }
 0x288   :  { %v764_v55 = vrot.slane %v763_v12, 1 }
 0x28a   :  { %v765_v32 = vadd.f32 %v764_v55, %v763_v12 }
 0x28c   :  { %v796_v33 = vmul.f32 -1.442695, %v765_v32 }
 0x28e   :  { %969 = vpow2.f32 %v796_v33 }
 0x29b   :  { %v970_v34 = vpop.eup %969 }
 0x29c   :  { %v769_v14 = vadd.f32 1.0, %v970_v34 }
 0x29e   :  { %971 = vrcp.f32 %v769_v14 }
 0x2ab   :  { %v972_v35 = vpop.eup %971 }
 0x2ac   :  { %773 = vst.msk [vmem:[#allocation2] sm:$0x1] %vm772_vm10, %v972_v35 }
 0x2ad   :  { %984 = shalt.err (!%p981_p4)
}
 0x2ae   :  { %783 = dma.vmem_to_hbm [thread:$0]  %s781_s19, 16, %s1562_s6, [#allocation3]  }
 0x2af   :  { %993 = dma.done.wait [#allocation3], 16  }
 0x2b0   :  { %994 = vsyncadd [#allocation3], 4294967280 }
 0x2b1   :  { %787 = vsyncpa [#allocation3], 1 }

</bundles_post_ra>
